<compile_context>
chip_gen: v5e
topology: v5e:2x2
jax: 0.10.0
libtpu: 0.0.40
codegen_flags: <defaults>
</compile_context>

<pallas_src>
import functools

import jax
import jax.numpy as jnp
from jax import lax
from jax.experimental import pallas as pl
from jax.experimental.pallas import tpu as pltpu


# --------------------------- conv-as-matmul kernel ---------------------------

def _matmul_bias_act_kernel(a_ref, w_ref, b_ref, o_ref, acc_ref, *, leaky):
    """o = act(a @ w + b), tiled over (M, Cout, K) with an f32 accumulator."""
    k = pl.program_id(2)

    @pl.when(k == 0)
    def _init():
        acc_ref[...] = jnp.zeros_like(acc_ref)

    acc_ref[...] += jnp.dot(a_ref[...], w_ref[...],
                            preferred_element_type=jnp.float32)

    @pl.when(k == pl.num_programs(2) - 1)
    def _finalize():
        y = acc_ref[...] + b_ref[...]
        if leaky:
            y = jnp.maximum(y, 0.2 * y)          # LeakyReLU(0.2): one VPU max
        o_ref[...] = y.astype(o_ref.dtype)


def _pick_tile(dim, target):
    """Largest legal tile: `target` if it divides `dim`, else the full extent."""
    if dim <= target or dim % target != 0:
        return dim
    return target


def conv_matmul_bias_act(a, w, b, *, leaky, out_dtype=jnp.float32,
                         tm=256, tn=256, tk=512):
    """a: (M, K) bf16 im2col patches, w: (K, Cout) bf16, b: (1, Cout) f32.

    Tile targets (256-wide output, 512-deep K) fill the 256x256 MXU on
    v6e/v7x and stay well inside scoped VMEM; on the toy shapes they collapse
    to a single full-extent block.
    """
    M, K = a.shape
    Cout = w.shape[1]
    tm, tn, tk = _pick_tile(M, tm), _pick_tile(Cout, tn), _pick_tile(K, tk)
    grid = (M // tm, Cout // tn, K // tk)
    return pl.pallas_call(
        functools.partial(_matmul_bias_act_kernel, leaky=leaky),
        out_shape=jax.ShapeDtypeStruct((M, Cout), out_dtype),
        grid=grid,
        in_specs=[
            pl.BlockSpec((tm, tk), lambda i, j, k: (i, k)),
            pl.BlockSpec((tk, tn), lambda i, j, k: (k, j)),
            pl.BlockSpec((1, tn), lambda i, j, k: (0, j)),
        ],
        out_specs=pl.BlockSpec((tm, tn), lambda i, j, k: (i, j)),
        scratch_shapes=[pltpu.VMEM((tm, tn), jnp.float32)],
        compiler_params=pltpu.CompilerParams(
            dimension_semantics=("parallel", "parallel", "arbitrary")),
    )(a, w, b)


# ----------------- fused conv2 + InstanceNorm + LeakyReLU + conv3 ------------

def _conv2_in_conv3_kernel(p_ref, w2_ref, b2_ref, w3_ref, b3_ref, o_ref,
                           pad_ref, *, ho2, wo2, k3, eps):
    # conv2: bf16 MXU matmul, f32 accumulation, + bias.
    y = jnp.dot(p_ref[0], w2_ref[...], preferred_element_type=jnp.float32)
    y = y + b2_ref[...]                                    # (HW2, C2) f32

    # InstanceNorm2d(affine=False): biased variance over spatial, single pass,
    # kept in f32; LeakyReLU(0.2) as a max.
    mean = jnp.mean(y, axis=0, keepdims=True)
    var = jnp.mean(y * y, axis=0, keepdims=True) - mean * mean
    y = (y - mean) * lax.rsqrt(var + eps)
    y = jnp.maximum(y, 0.2 * y)

    # conv3: k3 x k3, stride 1, pad 1, Cout=1. A single output channel would
    # waste 127/128 MXU columns, so do it on the VPU: k3*k3 tap FMAs into a
    # (Ho3, Wo3, C2) accumulator + one lane reduction at the end. The zero
    # halo is built with a single interior block store into VMEM scratch.
    ho3 = ho2 + 2 - k3 + 1
    wo3 = wo2 + 2 - k3 + 1
    pad_ref[...] = jnp.zeros_like(pad_ref)                 # zero the 1-px halo
    pad_ref[1:1 + ho2, 1:1 + wo2, :] = y.reshape(ho2, wo2, y.shape[-1])

    w3 = w3_ref[...]                                       # (k3*k3, C2) f32
    acc = jnp.zeros((ho3, wo3, w3.shape[1]), jnp.float32)
    for i in range(k3):
        for j in range(k3):
            acc = acc + pad_ref[i:i + ho3, j:j + wo3, :] * w3[i * k3 + j]
    o_ref[0] = jnp.sum(acc, axis=-1) + b3_ref[...]


def conv2_in_conv3(p2, w2, b2, w3, b3, *, ho2, wo2, eps=1e-5):
    """p2: (N, HW2, K2) bf16 patches; one fused grid step per batch instance."""
    N, HW2, K2 = p2.shape
    C2 = w2.shape[1]
    KK = w3.shape[0]
    k3 = int(round(KK ** 0.5))
    ho3 = ho2 + 2 - k3 + 1
    wo3 = wo2 + 2 - k3 + 1
    return pl.pallas_call(
        functools.partial(_conv2_in_conv3_kernel,
                          ho2=ho2, wo2=wo2, k3=k3, eps=eps),
        out_shape=jax.ShapeDtypeStruct((N, ho3, wo3), jnp.float32),
        grid=(N,),
        in_specs=[
            pl.BlockSpec((1, HW2, K2), lambda n: (n, 0, 0)),
            pl.BlockSpec((K2, C2), lambda n: (0, 0)),
            pl.BlockSpec((1, C2), lambda n: (0, 0)),
            pl.BlockSpec((KK, C2), lambda n: (0, 0)),
            pl.BlockSpec((1, 1), lambda n: (0, 0)),
        ],
        out_specs=pl.BlockSpec((1, ho3, wo3), lambda n: (n, 0, 0)),
        scratch_shapes=[pltpu.VMEM((ho2 + 2, wo2 + 2, C2), jnp.float32)],
        compiler_params=pltpu.CompilerParams(
            dimension_semantics=("parallel",)),
    )(p2, w2, b2, w3, b3)


# ------------------------------- JAX glue ------------------------------------

def im2col_nhwc(x, k, stride, pad):
    """x: (N, H, W, C) -> patches (N, Ho*Wo, k*k*C); channels stay lane-minor.

    TODO(synk): at real 256x256 CycleGAN sizes, patch extraction should move
    in-kernel (shifted reads of a VMEM-resident tile) instead of XLA stacking.
    """
    N, H, W, C = x.shape
    xp = jnp.pad(x, ((0, 0), (pad, pad), (pad, pad), (0, 0)))
    Ho = (H + 2 * pad - k) // stride + 1
    Wo = (W + 2 * pad - k) // stride + 1
    taps = [xp[:, i:i + stride * Ho:stride, j:j + stride * Wo:stride, :]
            for i in range(k) for j in range(k)]
    p = jnp.stack(taps, axis=3)                            # (N, Ho, Wo, k*k, C)
    return p.reshape(N, Ho * Wo, k * k * C), Ho, Wo


def discriminator_forward(x, params):
    """x: (N, Cin, H, W) f32 (PyTorch layout) -> (N, 1, Ho3, Wo3) f32."""
    (w1, b1), (w2, b2), (w3, b3) = params
    N = x.shape[0]
    C1, C2 = w1.shape[0], w2.shape[0]
    k = w1.shape[-1]

    # Single relayout at the boundary; everything downstream stays NHWC.
    xh = jnp.transpose(x, (0, 2, 3, 1))

    # OIHW -> (kh*kw*Cin, Cout), matching the (tap-major, channel-minor) patch
    # ordering of im2col_nhwc. MXU operands in bf16, biases / conv3 in f32.
    w1m = w1.transpose(2, 3, 1, 0).reshape(-1, C1).astype(jnp.bfloat16)
    w2m = w2.transpose(2, 3, 1, 0).reshape(-1, C2).astype(jnp.bfloat16)
    w3m = w3.transpose(2, 3, 1, 0).reshape(k * k, C2).astype(jnp.float32)
    b1m = b1.reshape(1, C1).astype(jnp.float32)
    b2m = b2.reshape(1, C2).astype(jnp.float32)
    b3m = b3.reshape(1, 1).astype(jnp.float32)

    # conv1 (4x4, s2, p1) + bias + LeakyReLU(0.2): tiled MXU matmul kernel.
    p1, Ho1, Wo1 = im2col_nhwc(xh, k, 2, 1)
    a1 = p1.reshape(N * Ho1 * Wo1, -1).astype(jnp.bfloat16)
    y1 = conv_matmul_bias_act(a1, w1m, b1m, leaky=True, out_dtype=jnp.bfloat16)
    y1 = y1.reshape(N, Ho1, Wo1, C1)                       # NHWC, no transpose

    # conv2 (4x4, s2, p1) + bias + InstanceNorm2d + LeakyReLU(0.2)
    # + conv3 (4x4, s1, p1, Cout=1): one fused kernel, grid over N.
    p2, Ho2, Wo2 = im2col_nhwc(y1, k, 2, 1)                # already bf16
    out = conv2_in_conv3(p2, w2m, b2m, w3m, b3m, ho2=Ho2, wo2=Wo2)
    return out[:, None, :, :]                              # (N, 1, Ho3, Wo3)


def reference_forward(x, params):
    """Pure-JAX reference (mirrors the PyTorch module) for a correctness check."""
    (w1, b1), (w2, b2), (w3, b3) = params

    def conv(x, w, b, stride, pad):
        y = lax.conv_general_dilated(
            x, w, (stride, stride), [(pad, pad), (pad, pad)],
            dimension_numbers=('NCHW', 'OIHW', 'NCHW'),
            precision=lax.Precision.HIGHEST)
        return y + b[None, :, None, None]

    def leaky(v):
        return jnp.where(v >= 0, v, 0.2 * v)

    y = leaky(conv(x, w1, b1, 2, 1))
    y = conv(y, w2, b2, 2, 1)
    mean = y.mean(axis=(2, 3), keepdims=True)
    var = ((y - mean) ** 2).mean(axis=(2, 3), keepdims=True)
    y = leaky((y - mean) * lax.rsqrt(var + 1e-5))
    return conv(y, w3, b3, 1, 1)


# --------------------------------- main --------------------------------------

if __name__ == "__main__":
    key = jax.random.PRNGKey(0)
    k_x, k1, k2, k3, kb1, kb2, kb3 = jax.random.split(key, 7)

    in_channels = 3
    x = jax.random.normal(k_x, (2, in_channels, 16, 16), jnp.float32)

    # Deterministic synthetic parameters (shapes match nn.Conv2d defaults).
    w1 = 0.05 * jax.random.normal(k1, (64, in_channels, 4, 4), jnp.float32)
    b1 = 0.05 * jax.random.normal(kb1, (64,), jnp.float32)
    w2 = 0.05 * jax.random.normal(k2, (128, 64, 4, 4), jnp.float32)
    b2 = 0.05 * jax.random.normal(kb2, (128,), jnp.float32)
    w3 = 0.05 * jax.random.normal(k3, (1, 128, 4, 4), jnp.float32)
    b3 = 0.05 * jax.random.normal(kb3, (1,), jnp.float32)
    params = ((w1, b1), (w2, b2), (w3, b3))

    fwd = jax.jit(discriminator_forward)
    out = jax.block_until_ready(fwd(x, params))

    ref = jax.block_until_ready(reference_forward(x, params))
    assert out.shape == ref.shape == (2, 1, 3, 3), (out.shape, ref.shape)
    # bf16 MXU operands (f32 accumulation) vs. an f32 Precision.HIGHEST
    # reference: rounding accumulates over the K=48/1024 reductions, so the
    # tolerance is wider than an all-f32 check.
    assert jnp.allclose(out, ref, rtol=2e-2, atol=2e-2), \
        float(jnp.max(jnp.abs(out - ref)))

    print("KERNEL_OK")
</pallas_src>

<mosaic_0001>
module attributes {stable_mosaic.version = 11 : i64} {
  func.func @_matmul_bias_act_kernel(%arg0: i32, %arg1: i32, %arg2: i32, %arg3: memref<128x48xbf16, #tpu.memory_space<vmem>>, %arg4: memref<48x64xbf16, #tpu.memory_space<vmem>>, %arg5: memref<1x64xf32, #tpu.memory_space<vmem>>, %arg6: memref<128x64xbf16, #tpu.memory_space<vmem>>, %arg7: memref<128x64xf32, #tpu.memory_space<vmem>>) attributes {dimension_semantics = [#tpu.dimension_semantics<parallel>, #tpu.dimension_semantics<parallel>, #tpu.dimension_semantics<arbitrary>], iteration_bounds = array<i64: 1, 1, 1>, scalar_prefetch = 0 : i64, scratch_operands = 1 : i64, tpu.core_type = #tpu.core_type<tc>, window_params = [{transform_indices = @transform_0, window_bounds = array<i64: 128, 48>}, {transform_indices = @transform_1, window_bounds = array<i64: 48, 64>}, {transform_indices = @transform_2, window_bounds = array<i64: 1, 64>}, {transform_indices = @transform_3, window_bounds = array<i64: 128, 64>}]} {
    %c0_i32 = arith.constant 0 : i32
    %0 = arith.cmpi eq, %arg2, %c0_i32 : i32
    %1 = arith.extui %0 : i1 to i32
    %c0_i32_0 = arith.constant 0 : i32
    %2 = arith.cmpi ne, %1, %c0_i32_0 : i32
    scf.if %2 {
      %cst_10 = arith.constant 0.000000e+00 : f32
      %12 = vector.broadcast %cst_10 : f32 to vector<128x64xf32>
      %c0_11 = arith.constant 0 : index
      %c0_12 = arith.constant 0 : index
      %13 = vector.load %arg7[%c0_11, %c0_12] : memref<128x64xf32, #tpu.memory_space<vmem>>, vector<128x64xf32>
      tpu.vector_store %arg7[%c0_11, %c0_12], %12 {strides = array<i32>} : memref<128x64xf32, #tpu.memory_space<vmem>>, vector<128x64xf32>,
    } else {
    }
    %c0 = arith.constant 0 : index
    %c0_1 = arith.constant 0 : index
    %3 = vector.load %arg7[%c0, %c0_1] : memref<128x64xf32, #tpu.memory_space<vmem>>, vector<128x64xf32>
    %c0_2 = arith.constant 0 : index
    %c0_3 = arith.constant 0 : index
    %4 = vector.load %arg3[%c0_2, %c0_3] : memref<128x48xbf16, #tpu.memory_space<vmem>>, vector<128x48xbf16>
    %c0_4 = arith.constant 0 : index
    %c0_5 = arith.constant 0 : index
    %5 = vector.load %arg4[%c0_4, %c0_5] : memref<48x64xbf16, #tpu.memory_space<vmem>>, vector<48x64xbf16>
    %cst = arith.constant dense<0.000000e+00> : vector<128x64xf32>
    %6 = tpu.matmul %4, %5, %cst {dimension_numbers = #tpu.dot_dimension_numbers<[1], [0], [0], [1], [0, 0, 1, 1], [], []>} : vector<128x48xbf16>, vector<48x64xbf16>, vector<128x64xf32> -> vector<128x64xf32>
    %7 = arith.addf %3, %6 : vector<128x64xf32>
    %c0_6 = arith.constant 0 : index
    %c0_7 = arith.constant 0 : index
    %8 = vector.load %arg7[%c0_6, %c0_7] : memref<128x64xf32, #tpu.memory_space<vmem>>, vector<128x64xf32>
    tpu.vector_store %arg7[%c0_6, %c0_7], %7 {strides = array<i32>} : memref<128x64xf32, #tpu.memory_space<vmem>>, vector<128x64xf32>,
    %c0_i32_8 = arith.constant 0 : i32
    %9 = arith.cmpi eq, %arg2, %c0_i32_8 : i32
    %10 = arith.extui %9 : i1 to i32
    %c0_i32_9 = arith.constant 0 : i32
    %11 = arith.cmpi ne, %10, %c0_i32_9 : i32
    scf.if %11 {
      %c0_10 = arith.constant 0 : index
      %c0_11 = arith.constant 0 : index
      %12 = vector.load %arg7[%c0_10, %c0_11] : memref<128x64xf32, #tpu.memory_space<vmem>>, vector<128x64xf32>
      %c0_12 = arith.constant 0 : index
      %c0_13 = arith.constant 0 : index
      %13 = vector.load %arg5[%c0_12, %c0_13] : memref<1x64xf32, #tpu.memory_space<vmem>>, vector<1x64xf32>
      %14 = vector.broadcast %13 : vector<1x64xf32> to vector<128x64xf32>
      %15 = arith.addf %12, %14 : vector<128x64xf32>
      %cst_14 = arith.constant 2.000000e-01 : f32
      %16 = vector.broadcast %cst_14 : f32 to vector<128x64xf32>
      %17 = arith.mulf %16, %15 : vector<128x64xf32>
      %18 = arith.maximumf %15, %17 : vector<128x64xf32>
      %19 = arith.truncf %18 : vector<128x64xf32> to vector<128x64xbf16>
      %c0_15 = arith.constant 0 : index
      %c0_16 = arith.constant 0 : index
      %20 = vector.load %arg6[%c0_15, %c0_16] : memref<128x64xbf16, #tpu.memory_space<vmem>>, vector<128x64xbf16>
      tpu.vector_store %arg6[%c0_15, %c0_16], %19 {strides = array<i32>} : memref<128x64xbf16, #tpu.memory_space<vmem>>, vector<128x64xbf16>,
    } else {
    }
    return
  }
  func.func @transform_0(%arg0: i32, %arg1: i32, %arg2: i32) -> (i32, i32) {
    %c0_i32 = arith.constant 0 : i32
    return %arg0, %arg2 : i32, i32
  }
  func.func @transform_1(%arg0: i32, %arg1: i32, %arg2: i32) -> (i32, i32) {
    %c0_i32 = arith.constant 0 : i32
    return %arg2, %arg1 : i32, i32
  }
  func.func @transform_2(%arg0: i32, %arg1: i32, %arg2: i32) -> (i32, i32) {
    %c0_i32 = arith.constant 0 : i32
    %c0_i32_0 = arith.constant 0 : i32
    return %c0_i32, %arg1 : i32, i32
  }
  func.func @transform_3(%arg0: i32, %arg1: i32, %arg2: i32) -> (i32, i32) {
    %c0_i32 = arith.constant 0 : i32
    return %arg0, %arg1 : i32, i32
  }
}

module attributes {stable_mosaic.version = 11 : i64} {
  func.func @_conv2_in_conv3_kernel(%arg0: i32, %arg1: memref<1x16x1024xbf16, #tpu.memory_space<vmem>>, %arg2: memref<1024x128xbf16, #tpu.memory_space<vmem>>, %arg3: memref<1x128xf32, #tpu.memory_space<vmem>>, %arg4: memref<16x128xf32, #tpu.memory_space<vmem>>, %arg5: memref<1x1xf32, #tpu.memory_space<vmem>>, %arg6: memref<1x3x3xf32, #tpu.memory_space<vmem>>, %arg7: memref<6x6x128xf32, #tpu.memory_space<vmem>>) attributes {dimension_semantics = [#tpu.dimension_semantics<parallel>], iteration_bounds = array<i64: 2>, scalar_prefetch = 0 : i64, scratch_operands = 1 : i64, tpu.core_type = #tpu.core_type<tc>, window_params = [{transform_indices = @transform_0, window_bounds = array<i64: 1, 16, 1024>}, {pipeline_mode = #tpu.pipeline_mode<synchronous>, transform_indices = @transform_1, window_bounds = array<i64: 1024, 128>}, {pipeline_mode = #tpu.pipeline_mode<synchronous>, transform_indices = @transform_2, window_bounds = array<i64: 1, 128>}, {pipeline_mode = #tpu.pipeline_mode<synchronous>, transform_indices = @transform_3, window_bounds = array<i64: 16, 128>}, {pipeline_mode = #tpu.pipeline_mode<synchronous>, transform_indices = @transform_4, window_bounds = array<i64: 1, 1>}, {transform_indices = @transform_5, window_bounds = array<i64: 1, 3, 3>}]} {
    %c0 = arith.constant 0 : index
    %c0_0 = arith.constant 0 : index
    %c0_1 = arith.constant 0 : index
    %0 = vector.load %arg1[%c0, %c0_0, %c0_1] : memref<1x16x1024xbf16, #tpu.memory_space<vmem>>, vector<1x16x1024xbf16>
    %1 = vector.shape_cast %0 : vector<1x16x1024xbf16> to vector<16x1024xbf16>
    %c0_2 = arith.constant 0 : index
    %c0_3 = arith.constant 0 : index
    %2 = vector.load %arg2[%c0_2, %c0_3] : memref<1024x128xbf16, #tpu.memory_space<vmem>>, vector<1024x128xbf16>
    %cst = arith.constant dense<0.000000e+00> : vector<16x128xf32>
    %3 = tpu.matmul %1, %2, %cst {dimension_numbers = #tpu.dot_dimension_numbers<[1], [0], [0], [1], [0, 0, 1, 1], [], []>} : vector<16x1024xbf16>, vector<1024x128xbf16>, vector<16x128xf32> -> vector<16x128xf32>
    %c0_4 = arith.constant 0 : index
    %c0_5 = arith.constant 0 : index
    %4 = vector.load %arg3[%c0_4, %c0_5] : memref<1x128xf32, #tpu.memory_space<vmem>>, vector<1x128xf32>
    %5 = vector.broadcast %4 : vector<1x128xf32> to vector<16x128xf32>
    %6 = arith.addf %3, %5 : vector<16x128xf32>
    %cst_6 = arith.constant dense<0.000000e+00> : vector<128xf32>
    %7 = vector.multi_reduction <add>, %6, %cst_6 [0] : vector<16x128xf32> to vector<128xf32>
    %8 = vector.shape_cast %7 : vector<128xf32> to vector<1x128xf32>
    %cst_7 = arith.constant 1.600000e+01 : f32
    %9 = vector.broadcast %cst_7 : f32 to vector<1x128xf32>
    %10 = arith.divf %8, %9 : vector<1x128xf32>
    %11 = arith.mulf %6, %6 : vector<16x128xf32>
    %cst_8 = arith.constant dense<0.000000e+00> : vector<128xf32>
    %12 = vector.multi_reduction <add>, %11, %cst_8 [0] : vector<16x128xf32> to vector<128xf32>
    %13 = vector.shape_cast %12 : vector<128xf32> to vector<1x128xf32>
    %cst_9 = arith.constant 1.600000e+01 : f32
    %14 = vector.broadcast %cst_9 : f32 to vector<1x128xf32>
    %15 = arith.divf %13, %14 : vector<1x128xf32>
    %16 = arith.mulf %10, %10 : vector<1x128xf32>
    %17 = arith.subf %15, %16 : vector<1x128xf32>
    %18 = vector.broadcast %10 : vector<1x128xf32> to vector<16x128xf32>
    %19 = arith.subf %6, %18 : vector<16x128xf32>
    %cst_10 = arith.constant 9.99999974E-6 : f32
    %20 = vector.broadcast %cst_10 : f32 to vector<1x128xf32>
    %21 = arith.addf %17, %20 : vector<1x128xf32>
    %22 = math.rsqrt %21 : vector<1x128xf32>
    %23 = vector.broadcast %22 : vector<1x128xf32> to vector<16x128xf32>
    %24 = arith.mulf %19, %23 : vector<16x128xf32>
    %cst_11 = arith.constant 2.000000e-01 : f32
    %25 = vector.broadcast %cst_11 : f32 to vector<16x128xf32>
    %26 = arith.mulf %25, %24 : vector<16x128xf32>
    %27 = arith.maximumf %24, %26 : vector<16x128xf32>
    %cst_12 = arith.constant 0.000000e+00 : f32
    %28 = vector.broadcast %cst_12 : f32 to vector<6x6x128xf32>
    %c0_13 = arith.constant 0 : index
    %c0_14 = arith.constant 0 : index
    %c0_15 = arith.constant 0 : index
    %29 = vector.load %arg7[%c0_13, %c0_14, %c0_15] : memref<6x6x128xf32, #tpu.memory_space<vmem>>, vector<6x6x128xf32>
    tpu.vector_store %arg7[%c0_13, %c0_14, %c0_15], %28 {strides = array<i32>} : memref<6x6x128xf32, #tpu.memory_space<vmem>>, vector<6x6x128xf32>,
    %30 = vector.shape_cast %27 : vector<16x128xf32> to vector<4x4x128xf32>
    %c1 = arith.constant 1 : index
    %c1_16 = arith.constant 1 : index
    %c0_17 = arith.constant 0 : index
    %31 = vector.load %arg7[%c1, %c1_16, %c0_17] : memref<6x6x128xf32, #tpu.memory_space<vmem>>, vector<4x4x128xf32>
    tpu.vector_store %arg7[%c1, %c1_16, %c0_17], %30 {strides = array<i32>} : memref<6x6x128xf32, #tpu.memory_space<vmem>>, vector<4x4x128xf32>,
    %c0_18 = arith.constant 0 : index
    %c0_19 = arith.constant 0 : index
    %32 = vector.load %arg4[%c0_18, %c0_19] : memref<16x128xf32, #tpu.memory_space<vmem>>, vector<16x128xf32>
    %cst_20 = arith.constant 0.000000e+00 : f32
    %33 = vector.broadcast %cst_20 : f32 to vector<3x3x128xf32>
    %c0_21 = arith.constant 0 : index
    %c0_22 = arith.constant 0 : index
    %c0_23 = arith.constant 0 : index
    %34 = vector.load %arg7[%c0_21, %c0_22, %c0_23] : memref<6x6x128xf32, #tpu.memory_space<vmem>>, vector<3x3x128xf32>
    %35 = vector.extract_strided_slice %32 {offsets = [0, 0], sizes = [1, 128], strides = [1, 1]} : vector<16x128xf32> to vector<1x128xf32>
    %36 = vector.shape_cast %35 : vector<1x128xf32> to vector<128xf32>
    %37 = vector.shape_cast %36 : vector<128xf32> to vector<1x1x128xf32>
    %38 = vector.broadcast %37 : vector<1x1x128xf32> to vector<3x3x128xf32>
    %39 = arith.mulf %34, %38 : vector<3x3x128xf32>
    %40 = arith.addf %33, %39 : vector<3x3x128xf32>
    %c0_24 = arith.constant 0 : index
    %c1_25 = arith.constant 1 : index
    %c0_26 = arith.constant 0 : index
    %41 = vector.load %arg7[%c0_24, %c1_25, %c0_26] : memref<6x6x128xf32, #tpu.memory_space<vmem>>, vector<3x3x128xf32>
    %42 = vector.extract_strided_slice %32 {offsets = [1, 0], sizes = [1, 128], strides = [1, 1]} : vector<16x128xf32> to vector<1x128xf32>
    %43 = vector.shape_cast %42 : vector<1x128xf32> to vector<128xf32>
    %44 = vector.shape_cast %43 : vector<128xf32> to vector<1x1x128xf32>
    %45 = vector.broadcast %44 : vector<1x1x128xf32> to vector<3x3x128xf32>
    %46 = arith.mulf %41, %45 : vector<3x3x128xf32>
    %47 = arith.addf %40, %46 : vector<3x3x128xf32>
    %c0_27 = arith.constant 0 : index
    %c2 = arith.constant 2 : index
    %c0_28 = arith.constant 0 : index
    %48 = vector.load %arg7[%c0_27, %c2, %c0_28] : memref<6x6x128xf32, #tpu.memory_space<vmem>>, vector<3x3x128xf32>
    %49 = vector.extract_strided_slice %32 {offsets = [2, 0], sizes = [1, 128], strides = [1, 1]} : vector<16x128xf32> to vector<1x128xf32>
    %50 = vector.shape_cast %49 : vector<1x128xf32> to vector<128xf32>
    %51 = vector.shape_cast %50 : vector<128xf32> to vector<1x1x128xf32>
    %52 = vector.broadcast %51 : vector<1x1x128xf32> to vector<3x3x128xf32>
    %53 = arith.mulf %48, %52 : vector<3x3x128xf32>
    %54 = arith.addf %47, %53 : vector<3x3x128xf32>
    %c0_29 = arith.constant 0 : index
    %c3 = arith.constant 3 : index
    %c0_30 = arith.constant 0 : index
    %55 = vector.load %arg7[%c0_29, %c3, %c0_30] : memref<6x6x128xf32, #tpu.memory_space<vmem>>, vector<3x3x128xf32>
    %56 = vector.extract_strided_slice %32 {offsets = [3, 0], sizes = [1, 128], strides = [1, 1]} : vector<16x128xf32> to vector<1x128xf32>
    %57 = vector.shape_cast %56 : vector<1x128xf32> to vector<128xf32>
    %58 = vector.shape_cast %57 : vector<128xf32> to vector<1x1x128xf32>
    %59 = vector.broadcast %58 : vector<1x1x128xf32> to vector<3x3x128xf32>
    %60 = arith.mulf %55, %59 : vector<3x3x128xf32>
    %61 = arith.addf %54, %60 : vector<3x3x128xf32>
    %c1_31 = arith.constant 1 : index
    %c0_32 = arith.constant 0 : index
    %c0_33 = arith.constant 0 : index
    %62 = vector.load %arg7[%c1_31, %c0_32, %c0_33] : memref<6x6x128xf32, #tpu.memory_space<vmem>>, vector<3x3x128xf32>
    %63 = vector.extract_strided_slice %32 {offsets = [4, 0], sizes = [1, 128], strides = [1, 1]} : vector<16x128xf32> to vector<1x128xf32>
    %64 = vector.shape_cast %63 : vector<1x128xf32> to vector<128xf32>
    %65 = vector.shape_cast %64 : vector<128xf32> to vector<1x1x128xf32>
    %66 = vector.broadcast %65 : vector<1x1x128xf32> to vector<3x3x128xf32>
    %67 = arith.mulf %62, %66 : vector<3x3x128xf32>
    %68 = arith.addf %61, %67 : vector<3x3x128xf32>
    %c1_34 = arith.constant 1 : index
    %c1_35 = arith.constant 1 : index
    %c0_36 = arith.constant 0 : index
    %69 = vector.load %arg7[%c1_34, %c1_35, %c0_36] : memref<6x6x128xf32, #tpu.memory_space<vmem>>, vector<3x3x128xf32>
    %70 = vector.extract_strided_slice %32 {offsets = [5, 0], sizes = [1, 128], strides = [1, 1]} : vector<16x128xf32> to vector<1x128xf32>
    %71 = vector.shape_cast %70 : vector<1x128xf32> to vector<128xf32>
    %72 = vector.shape_cast %71 : vector<128xf32> to vector<1x1x128xf32>
    %73 = vector.broadcast %72 : vector<1x1x128xf32> to vector<3x3x128xf32>
    %74 = arith.mulf %69, %73 : vector<3x3x128xf32>
    %75 = arith.addf %68, %74 : vector<3x3x128xf32>
    %c1_37 = arith.constant 1 : index
    %c2_38 = arith.constant 2 : index
    %c0_39 = arith.constant 0 : index
    %76 = vector.load %arg7[%c1_37, %c2_38, %c0_39] : memref<6x6x128xf32, #tpu.memory_space<vmem>>, vector<3x3x128xf32>
    %77 = vector.extract_strided_slice %32 {offsets = [6, 0], sizes = [1, 128], strides = [1, 1]} : vector<16x128xf32> to vector<1x128xf32>
    %78 = vector.shape_cast %77 : vector<1x128xf32> to vector<128xf32>
    %79 = vector.shape_cast %78 : vector<128xf32> to vector<1x1x128xf32>
    %80 = vector.broadcast %79 : vector<1x1x128xf32> to vector<3x3x128xf32>
    %81 = arith.mulf %76, %80 : vector<3x3x128xf32>
    %82 = arith.addf %75, %81 : vector<3x3x128xf32>
    %c1_40 = arith.constant 1 : index
    %c3_41 = arith.constant 3 : index
    %c0_42 = arith.constant 0 : index
    %83 = vector.load %arg7[%c1_40, %c3_41, %c0_42] : memref<6x6x128xf32, #tpu.memory_space<vmem>>, vector<3x3x128xf32>
    %84 = vector.extract_strided_slice %32 {offsets = [7, 0], sizes = [1, 128], strides = [1, 1]} : vector<16x128xf32> to vector<1x128xf32>
    %85 = vector.shape_cast %84 : vector<1x128xf32> to vector<128xf32>
    %86 = vector.shape_cast %85 : vector<128xf32> to vector<1x1x128xf32>
    %87 = vector.broadcast %86 : vector<1x1x128xf32> to vector<3x3x128xf32>
    %88 = arith.mulf %83, %87 : vector<3x3x128xf32>
    %89 = arith.addf %82, %88 : vector<3x3x128xf32>
    %c2_43 = arith.constant 2 : index
    %c0_44 = arith.constant 0 : index
    %c0_45 = arith.constant 0 : index
    %90 = vector.load %arg7[%c2_43, %c0_44, %c0_45] : memref<6x6x128xf32, #tpu.memory_space<vmem>>, vector<3x3x128xf32>
    %91 = vector.extract_strided_slice %32 {offsets = [8, 0], sizes = [1, 128], strides = [1, 1]} : vector<16x128xf32> to vector<1x128xf32>
    %92 = vector.shape_cast %91 : vector<1x128xf32> to vector<128xf32>
    %93 = vector.shape_cast %92 : vector<128xf32> to vector<1x1x128xf32>
    %94 = vector.broadcast %93 : vector<1x1x128xf32> to vector<3x3x128xf32>
    %95 = arith.mulf %90, %94 : vector<3x3x128xf32>
    %96 = arith.addf %89, %95 : vector<3x3x128xf32>
    %c2_46 = arith.constant 2 : index
    %c1_47 = arith.constant 1 : index
    %c0_48 = arith.constant 0 : index
    %97 = vector.load %arg7[%c2_46, %c1_47, %c0_48] : memref<6x6x128xf32, #tpu.memory_space<vmem>>, vector<3x3x128xf32>
    %98 = vector.extract_strided_slice %32 {offsets = [9, 0], sizes = [1, 128], strides = [1, 1]} : vector<16x128xf32> to vector<1x128xf32>
    %99 = vector.shape_cast %98 : vector<1x128xf32> to vector<128xf32>
    %100 = vector.shape_cast %99 : vector<128xf32> to vector<1x1x128xf32>
    %101 = vector.broadcast %100 : vector<1x1x128xf32> to vector<3x3x128xf32>
    %102 = arith.mulf %97, %101 : vector<3x3x128xf32>
    %103 = arith.addf %96, %102 : vector<3x3x128xf32>
    %c2_49 = arith.constant 2 : index
    %c2_50 = arith.constant 2 : index
    %c0_51 = arith.constant 0 : index
    %104 = vector.load %arg7[%c2_49, %c2_50, %c0_51] : memref<6x6x128xf32, #tpu.memory_space<vmem>>, vector<3x3x128xf32>
    %105 = vector.extract_strided_slice %32 {offsets = [10, 0], sizes = [1, 128], strides = [1, 1]} : vector<16x128xf32> to vector<1x128xf32>
    %106 = vector.shape_cast %105 : vector<1x128xf32> to vector<128xf32>
    %107 = vector.shape_cast %106 : vector<128xf32> to vector<1x1x128xf32>
    %108 = vector.broadcast %107 : vector<1x1x128xf32> to vector<3x3x128xf32>
    %109 = arith.mulf %104, %108 : vector<3x3x128xf32>
    %110 = arith.addf %103, %109 : vector<3x3x128xf32>
    %c2_52 = arith.constant 2 : index
    %c3_53 = arith.constant 3 : index
    %c0_54 = arith.constant 0 : index
    %111 = vector.load %arg7[%c2_52, %c3_53, %c0_54] : memref<6x6x128xf32, #tpu.memory_space<vmem>>, vector<3x3x128xf32>
    %112 = vector.extract_strided_slice %32 {offsets = [11, 0], sizes = [1, 128], strides = [1, 1]} : vector<16x128xf32> to vector<1x128xf32>
    %113 = vector.shape_cast %112 : vector<1x128xf32> to vector<128xf32>
    %114 = vector.shape_cast %113 : vector<128xf32> to vector<1x1x128xf32>
    %115 = vector.broadcast %114 : vector<1x1x128xf32> to vector<3x3x128xf32>
    %116 = arith.mulf %111, %115 : vector<3x3x128xf32>
    %117 = arith.addf %110, %116 : vector<3x3x128xf32>
    %c3_55 = arith.constant 3 : index
    %c0_56 = arith.constant 0 : index
    %c0_57 = arith.constant 0 : index
    %118 = vector.load %arg7[%c3_55, %c0_56, %c0_57] : memref<6x6x128xf32, #tpu.memory_space<vmem>>, vector<3x3x128xf32>
    %119 = vector.extract_strided_slice %32 {offsets = [12, 0], sizes = [1, 128], strides = [1, 1]} : vector<16x128xf32> to vector<1x128xf32>
    %120 = vector.shape_cast %119 : vector<1x128xf32> to vector<128xf32>
    %121 = vector.shape_cast %120 : vector<128xf32> to vector<1x1x128xf32>
    %122 = vector.broadcast %121 : vector<1x1x128xf32> to vector<3x3x128xf32>
    %123 = arith.mulf %118, %122 : vector<3x3x128xf32>
    %124 = arith.addf %117, %123 : vector<3x3x128xf32>
    %c3_58 = arith.constant 3 : index
    %c1_59 = arith.constant 1 : index
    %c0_60 = arith.constant 0 : index
    %125 = vector.load %arg7[%c3_58, %c1_59, %c0_60] : memref<6x6x128xf32, #tpu.memory_space<vmem>>, vector<3x3x128xf32>
    %126 = vector.extract_strided_slice %32 {offsets = [13, 0], sizes = [1, 128], strides = [1, 1]} : vector<16x128xf32> to vector<1x128xf32>
    %127 = vector.shape_cast %126 : vector<1x128xf32> to vector<128xf32>
    %128 = vector.shape_cast %127 : vector<128xf32> to vector<1x1x128xf32>
    %129 = vector.broadcast %128 : vector<1x1x128xf32> to vector<3x3x128xf32>
    %130 = arith.mulf %125, %129 : vector<3x3x128xf32>
    %131 = arith.addf %124, %130 : vector<3x3x128xf32>
    %c3_61 = arith.constant 3 : index
    %c2_62 = arith.constant 2 : index
    %c0_63 = arith.constant 0 : index
    %132 = vector.load %arg7[%c3_61, %c2_62, %c0_63] : memref<6x6x128xf32, #tpu.memory_space<vmem>>, vector<3x3x128xf32>
    %133 = vector.extract_strided_slice %32 {offsets = [14, 0], sizes = [1, 128], strides = [1, 1]} : vector<16x128xf32> to vector<1x128xf32>
    %134 = vector.shape_cast %133 : vector<1x128xf32> to vector<128xf32>
    %135 = vector.shape_cast %134 : vector<128xf32> to vector<1x1x128xf32>
    %136 = vector.broadcast %135 : vector<1x1x128xf32> to vector<3x3x128xf32>
    %137 = arith.mulf %132, %136 : vector<3x3x128xf32>
    %138 = arith.addf %131, %137 : vector<3x3x128xf32>
    %c3_64 = arith.constant 3 : index
    %c3_65 = arith.constant 3 : index
    %c0_66 = arith.constant 0 : index
    %139 = vector.load %arg7[%c3_64, %c3_65, %c0_66] : memref<6x6x128xf32, #tpu.memory_space<vmem>>, vector<3x3x128xf32>
    %140 = vector.extract_strided_slice %32 {offsets = [15, 0], sizes = [1, 128], strides = [1, 1]} : vector<16x128xf32> to vector<1x128xf32>
    %141 = vector.shape_cast %140 : vector<1x128xf32> to vector<128xf32>
    %142 = vector.shape_cast %141 : vector<128xf32> to vector<1x1x128xf32>
    %143 = vector.broadcast %142 : vector<1x1x128xf32> to vector<3x3x128xf32>
    %144 = arith.mulf %139, %143 : vector<3x3x128xf32>
    %145 = arith.addf %138, %144 : vector<3x3x128xf32>
    %cst_67 = arith.constant dense<0.000000e+00> : vector<3x3xf32>
    %146 = vector.multi_reduction <add>, %145, %cst_67 [2] : vector<3x3x128xf32> to vector<3x3xf32>
    %c0_68 = arith.constant 0 : index
    %c0_69 = arith.constant 0 : index
    %147 = vector.load %arg5[%c0_68, %c0_69] : memref<1x1xf32, #tpu.memory_space<vmem>>, vector<1x1xf32>
    %148 = vector.broadcast %147 : vector<1x1xf32> to vector<3x3xf32>
    %149 = arith.addf %146, %148 : vector<3x3xf32>
    %c0_70 = arith.constant 0 : index
    %c0_71 = arith.constant 0 : index
    %c0_72 = arith.constant 0 : index
    %150 = vector.load %arg6[%c0_70, %c0_71, %c0_72] : memref<1x3x3xf32, #tpu.memory_space<vmem>>, vector<1x3x3xf32>
    %151 = vector.shape_cast %150 : vector<1x3x3xf32> to vector<3x3xf32>
    %152 = vector.shape_cast %149 : vector<3x3xf32> to vector<1x3x3xf32>
    tpu.vector_store %arg6[%c0_70, %c0_71, %c0_72], %152 {strides = array<i32>} : memref<1x3x3xf32, #tpu.memory_space<vmem>>, vector<1x3x3xf32>,
    return
  }
  func.func @transform_0(%arg0: i32) -> (i32, i32, i32) {
    %c0_i32 = arith.constant 0 : i32
    %c0_i32_0 = arith.constant 0 : i32
    %c0_i32_1 = arith.constant 0 : i32
    return %arg0, %c0_i32, %c0_i32_0 : i32, i32, i32
  }
  func.func @transform_1(%arg0: i32) -> (i32, i32) {
    %c0_i32 = arith.constant 0 : i32
    %c0_i32_0 = arith.constant 0 : i32
    %c0_i32_1 = arith.constant 0 : i32
    return %c0_i32, %c0_i32_0 : i32, i32
  }
  func.func @transform_2(%arg0: i32) -> (i32, i32) {
    %c0_i32 = arith.constant 0 : i32
    %c0_i32_0 = arith.constant 0 : i32
    %c0_i32_1 = arith.constant 0 : i32
    return %c0_i32, %c0_i32_0 : i32, i32
  }
  func.func @transform_3(%arg0: i32) -> (i32, i32) {
    %c0_i32 = arith.constant 0 : i32
    %c0_i32_0 = arith.constant 0 : i32
    %c0_i32_1 = arith.constant 0 : i32
    return %c0_i32, %c0_i32_0 : i32, i32
  }
  func.func @transform_4(%arg0: i32) -> (i32, i32) {
    %c0_i32 = arith.constant 0 : i32
    %c0_i32_0 = arith.constant 0 : i32
    %c0_i32_1 = arith.constant 0 : i32
    return %c0_i32, %c0_i32_0 : i32, i32
  }
  func.func @transform_5(%arg0: i32) -> (i32, i32, i32) {
    %c0_i32 = arith.constant 0 : i32
    %c0_i32_0 = arith.constant 0 : i32
    %c0_i32_1 = arith.constant 0 : i32
    return %arg0, %c0_i32, %c0_i32_0 : i32, i32, i32
  }
}

</mosaic_0001>

<bundles_post_ra>
// kernel: discriminator_forward.2
= control target key start
LH: loop header
LB: loop body
LE: loop exit
PB: predicated region body
PF: predicated region fallthrough
CT: control target
= control target key end

     0   :  { %vm19_vm0 = vcmask 523264   ;;  %v421_v1 = vmov 0.0   ;;  %vm132_vm1 = vcmask 392192   ;;  %vm326_vm2 = vcmask 519168   ;;  %s600_s1 = inlined_call_operand.vmem [shape: bf16[48,64], index: 1, kind: input, shape index: {}]   ;;  %s601_s2 = inlined_call_operand.vmem [shape: f32[1,64], index: 2, kind: input, shape index: {}]   ;;  %s602_s0 = inlined_call_operand.vmem [shape: bf16[128,48], index: 0, kind: input, shape index: {}]   ;;  %s603_s3 = inlined_call_operand.vmem [shape: bf16[128,64], index: 3, kind: output, shape index: {}]  }
   0x1   :  { %v409_v0 = vld [vmem:[%s600_s1 + $0x10] sm:$0xff]  ;;  %20 = vst.msk [vmem:[#allocation2] sm:$0xff] %vm19_vm0, %v421_v1  ;;  %v408_v2 = vld [vmem:[%s600_s1 + $0x8] sm:$0xff]  ;;  %v407_v3 = vld [vmem:[%s600_s1] sm:$0xff] }
   0x2   :  { %21 = vst.msk [vmem:[#allocation2 + $0x8] sm:$0xff] %vm19_vm0, %v421_v1  ;;  %162 = vmatpush.bf16.msra.mxu0 %v409_v0  ;;  %410 = vmatpush.bf16.msra.mxu1 %v409_v0  ;;  %v399_v4 = vld [vmem:[%s602_s0] sm:$0xff]  ;;  %v401_v5 = vld [vmem:[%s602_s0 + $0x10] sm:$0xff]  ;;  %v400_v8 = vld [vmem:[%s602_s0 + $0x8] sm:$0xff] }
   0x3   :  { %22 = vst.msk [vmem:[#allocation2 + $0x10] sm:$0xff] %vm19_vm0, %v421_v1  ;;  %411 = vmatpush.bf16.msra.mxu2 %v409_v0  ;;  %412 = vmatpush.bf16.msra.mxu3 %v409_v0  ;;  %v403_v6 = vld [vmem:[%s602_s0 + $0x20] sm:$0xff]  ;;  %v405_v7 = vld [vmem:[%s602_s0 + $0x30] sm:$0xff]  ;;  %v402_v9 = vld [vmem:[%s602_s0 + $0x18] sm:$0xff] }
   0x4   :  { %23 = vst.msk [vmem:[#allocation2 + $0x18] sm:$0xff] %vm19_vm0, %v421_v1  ;;  %v404_v10 = vld [vmem:[%s602_s0 + $0x28] sm:$0xff]  ;;  %v406_v11 = vld [vmem:[%s602_s0 + $0x38] sm:$0xff]  ;;  %v504_v22 = vld [vmem:[%s601_s2] ss:$0 sm:$0xff] }
   0x5   :  { %24 = vst.msk [vmem:[#allocation2 + $0x20] sm:$0xff] %vm19_vm0, %v421_v1 }
   0x6   :  { %25 = vst.msk [vmem:[#allocation2 + $0x28] sm:$0xff] %vm19_vm0, %v421_v1  ;;  %163 = vmatpush.bf16.msra.mxu0 %v408_v2  ;;  %413 = vmatpush.bf16.msra.mxu1 %v408_v2 }
   0x7   :  { %26 = vst.msk [vmem:[#allocation2 + $0x30] sm:$0xff] %vm19_vm0, %v421_v1  ;;  %414 = vmatpush.bf16.msra.mxu2 %v408_v2  ;;  %415 = vmatpush.bf16.msra.mxu3 %v408_v2 }
   0x8   :  { %27 = vst.msk [vmem:[#allocation2 + $0x38] sm:$0xff] %vm19_vm0, %v421_v1  ;;  %v36_v12 = vld [vmem:[#allocation2] sm:$0xff] }
   0x9   :  { %28 = vst.msk [vmem:[#allocation2 + $0x40] sm:$0xff] %vm19_vm0, %v421_v1  ;;  %v37_v20 = vld [vmem:[#allocation2 + $0x8] sm:$0xff] }
   0xa   :  { %29 = vst.msk [vmem:[#allocation2 + $0x48] sm:$0xff] %vm19_vm0, %v421_v1  ;;  %164 = vmatpush.bf16.msra.mxu0 %v407_v3  ;;  %416 = vmatpush.bf16.msra.mxu1 %v407_v3  ;;  %v38_v42 = vld [vmem:[#allocation2 + $0x10] sm:$0xff] }
   0xb   :  { %30 = vst.msk [vmem:[#allocation2 + $0x50] sm:$0xff] %vm19_vm0, %v421_v1  ;;  %417 = vmatpush.bf16.msra.mxu2 %v407_v3  ;;  %418 = vmatpush.bf16.msra.mxu3 %v407_v3 }
   0xc   :  { %31 = vst.msk [vmem:[#allocation2 + $0x58] sm:$0xff] %vm19_vm0, %v421_v1  ;;  %v40_v13 = vld [vmem:[#allocation2 + $0x20] sm:$0xff] }
   0xd   :  { %32 = vst.msk [vmem:[#allocation2 + $0x60] sm:$0xff] %vm19_vm0, %v421_v1  ;;  %391 = vmatmul.msk.bf16.vlgmr.msra.gmra.mxu0 %vm132_vm1, %v399_v4  ;;  %393 = vmatmul.msk.bf16.vlgmr.msra.gmra.mxu1 %vm132_vm1, %v401_v5  ;;  %v41_v21 = vld [vmem:[#allocation2 + $0x28] sm:$0xff] }
   0xe   :  { %33 = vst.msk [vmem:[#allocation2 + $0x68] sm:$0xff] %vm19_vm0, %v421_v1  ;;  %395 = vmatmul.msk.bf16.vlgmr.msra.gmra.mxu2 %vm132_vm1, %v403_v6  ;;  %397 = vmatmul.msk.bf16.vlgmr.msra.gmra.mxu3 %vm132_vm1, %v405_v7  ;;  %v42_v46 = vld [vmem:[#allocation2 + $0x30] sm:$0xff] }
   0xf   :  { %34 = vst.msk [vmem:[#allocation2 + $0x70] sm:$0xff] %vm19_vm0, %v421_v1 }
  0x10   :  { %35 = vst.msk [vmem:[#allocation2 + $0x78] sm:$0xff] %vm19_vm0, %v421_v1  ;;  %v44_v18 = vld [vmem:[#allocation2 + $0x40] sm:$0xff] }
  0x11   :  { %v45_v36 = vld [vmem:[#allocation2 + $0x48] sm:$0xff] }
  0x12   :  { %v46_v3 = vld [vmem:[#allocation2 + $0x50] sm:$0xff] }
  0x14   :  { %v48_v19 = vld [vmem:[#allocation2 + $0x60] sm:$0xff] }
  0x15   :  { %v49_v38 = vld [vmem:[#allocation2 + $0x68] sm:$0xff] }
  0x1d   :  { %392 = vmatmul.msk.bf16.gmra.mxu0 %vm132_vm1, %v400_v8  ;;  %394 = vmatmul.msk.bf16.gmra.mxu1 %vm132_vm1, %v402_v9  ;;  %v50_v8 = vld [vmem:[#allocation2 + $0x70] sm:$0xff] }
  0x1e   :  { %396 = vmatmul.msk.bf16.gmra.mxu2 %vm132_vm1, %v404_v10  ;;  %398 = vmatmul.msk.bf16.gmra.mxu3 %vm132_vm1, %v406_v11 }
  0x8a   :  { %v166_v14 = vpop.f32.mrf.mxu0  ;;  %v176_v15 = vpop.f32.mrf.mxu1 }
  0x8b   :  { %v206_v16 = vadd.f32 %v166_v14, %v36_v12  ;;  %v210_v17 = vadd.f32 %v176_v15, %v40_v13  ;;  %v39_v12 = vld [vmem:[#allocation2 + $0x18] sm:$0xff] }
  0x8d   :  { %223 = vst.msk [vmem:[#allocation2] sm:$0xff] %vm19_vm0, %v206_v16 }
  0x8e   :  { %227 = vst.msk [vmem:[#allocation2 + $0x20] sm:$0xff] %vm19_vm0, %v210_v17  ;;  %v43_v17 = vld [vmem:[#allocation2 + $0x38] sm:$0xff] }
  0x91   :  { %v186_v23 = vpop.f32.mrf.mxu2  ;;  %v196_v24 = vpop.f32.mrf.mxu3 }
  0x92   :  { %v214_v25 = vadd.f32 %v186_v23, %v44_v18  ;;  %v218_v26 = vadd.f32 %v196_v24, %v48_v19  ;;  %v168_v27 = vpop.f32.mrf.mxu0  ;;  %v178_v28 = vpop.f32.mrf.mxu1 }
  0x93   :  { %v207_v29 = vadd.f32 %v168_v27, %v37_v20  ;;  %v211_v30 = vadd.f32 %v178_v28, %v41_v21  ;;  %v47_v28 = vld [vmem:[#allocation2 + $0x58] sm:$0xff] }
  0x94   :  { %v242_v31 = vld [vmem:[#allocation2] sm:$0xff]  ;;  %231 = vst.msk [vmem:[#allocation2 + $0x40] sm:$0xff] %vm19_vm0, %v214_v25 }
  0x95   :  { %v262_v32 = vadd.f32 %v504_v22, %v242_v31  ;;  %v246_v33 = vld [vmem:[#allocation2 + $0x20] sm:$0xff]  ;;  %235 = vst.msk [vmem:[#allocation2 + $0x60] sm:$0xff] %vm19_vm0, %v218_v26 }
  0x96   :  { %v266_v34 = vadd.f32 %v504_v22, %v246_v33  ;;  %224 = vst.msk [vmem:[#allocation2 + $0x8] sm:$0xff] %vm19_vm0, %v207_v29  ;;  %v51_v29 = vld [vmem:[#allocation2 + $0x78] sm:$0xff] }
  0x97   :  { %v278_v35 = vmul.f32 0.2, %v262_v32  ;;  %228 = vst.msk [vmem:[#allocation2 + $0x28] sm:$0xff] %vm19_vm0, %v211_v30 }
  0x98   :  { %v282_v37 = vmul.f32 0.2, %v266_v34 }
  0x99   :  { %v294_v39 = vmax.f32 %v262_v32, %v278_v35  ;;  %v188_v40 = vpop.f32.mrf.mxu2  ;;  %v198_v41 = vpop.f32.mrf.mxu3 }
  0x9a   :  { %v298_v43 = vmax.f32 %v266_v34, %v282_v37  ;;  %v215_v44 = vadd.f32 %v188_v40, %v45_v36  ;;  %v171_v45 = vpop.f32.mrf.mxu0  ;;  %v181_v47 = vpop.f32.mrf.mxu1  ;;  %v219_v50 = vadd.f32 %v198_v41, %v49_v38 }
  0x9b   :  { %v310_v48 = vpack.c.bf16 %v294_v39, %v294_v39  ;;  %v250_v49 = vld [vmem:[#allocation2 + $0x40] sm:$0xff]  ;;  %v208_v54 = vadd.f32 %v171_v45, %v38_v42  ;;  %v212_v57 = vadd.f32 %v181_v47, %v42_v46 }
  0x9c   :  { %v314_v51 = vpack.c.bf16 %v298_v43, %v298_v43  ;;  %v270_v52 = vadd.f32 %v504_v22, %v250_v49  ;;  %v254_v53 = vld [vmem:[#allocation2 + $0x60] sm:$0xff]  ;;  %232 = vst.msk [vmem:[#allocation2 + $0x48] sm:$0xff] %vm19_vm0, %v215_v44 }
  0x9d   :  { %327 = vst.msk [vmem:[%s603_s3] sm:$0xf] %vm326_vm2, %v310_v48  ;;  %v274_v55 = vadd.f32 %v504_v22, %v254_v53  ;;  %v243_v56 = vld [vmem:[#allocation2 + $0x8] sm:$0xff] }
  0x9e   :  { %331 = vst.msk [vmem:[%s603_s3 + $0x10] sm:$0xf] %vm326_vm2, %v314_v51  ;;  %v286_v58 = vmul.f32 0.2, %v270_v52  ;;  %v263_v59 = vadd.f32 %v504_v22, %v243_v56  ;;  %v247_v60 = vld [vmem:[#allocation2 + $0x28] sm:$0xff] }
  0x9f   :  { %v290_v61 = vmul.f32 0.2, %v274_v55  ;;  %v267_v62 = vadd.f32 %v504_v22, %v247_v60  ;;  %236 = vst.msk [vmem:[#allocation2 + $0x68] sm:$0xff] %vm19_vm0, %v219_v50 }
  0xa0   :  { %v302_v63 = vmax.f32 %v270_v52, %v286_v58  ;;  %v279_v0 = vmul.f32 0.2, %v263_v59  ;;  %225 = vst.msk [vmem:[#allocation2 + $0x10] sm:$0xff] %vm19_vm0, %v208_v54 }
  0xa1   :  { %v306_v1 = vmax.f32 %v274_v55, %v290_v61  ;;  %v283_v2 = vmul.f32 0.2, %v267_v62  ;;  %229 = vst.msk [vmem:[#allocation2 + $0x30] sm:$0xff] %vm19_vm0, %v212_v57  ;;  %v191_v4 = vpop.f32.mrf.mxu2  ;;  %v201_v5 = vpop.f32.mrf.mxu3 }
  0xa2   :  { %v318_v6 = vpack.c.bf16 %v302_v63, %v302_v63  ;;  %v295_v7 = vmax.f32 %v263_v59, %v279_v0  ;;  %v173_v13 = vpop.f32.mrf.mxu0  ;;  %v216_v16 = vadd.f32 %v191_v4, %v46_v3  ;;  %v183_v18 = vpop.f32.mrf.mxu1  ;;  %v220_v20 = vadd.f32 %v201_v5, %v50_v8 }
  0xa3   :  { %v322_v9 = vpack.c.bf16 %v306_v1, %v306_v1  ;;  %v299_v10 = vmax.f32 %v267_v62, %v283_v2  ;;  %v251_v11 = vld [vmem:[#allocation2 + $0x48] sm:$0xff]  ;;  %v209_v24 = vadd.f32 %v173_v13, %v39_v12  ;;  %v213_v27 = vadd.f32 %v183_v18, %v43_v17 }
  0xa4   :  { %335 = vst.msk [vmem:[%s603_s3 + $0x20] sm:$0xf] %vm326_vm2, %v318_v6  ;;  %v311_v14 = vpack.c.bf16 %v295_v7, %v295_v7  ;;  %v271_v15 = vadd.f32 %v504_v22, %v251_v11 }
  0xa5   :  { %339 = vst.msk [vmem:[%s603_s3 + $0x30] sm:$0xf] %vm326_vm2, %v322_v9  ;;  %v315_v19 = vpack.c.bf16 %v299_v10, %v299_v10 }
  0xa6   :  { %328 = vst.msk [vmem:[%s603_s3 + $0x4] sm:$0xf] %vm326_vm2, %v311_v14  ;;  %v287_v21 = vmul.f32 0.2, %v271_v15  ;;  %v255_v23 = vld [vmem:[#allocation2 + $0x68] sm:$0xff] }
  0xa7   :  { %332 = vst.msk [vmem:[%s603_s3 + $0x14] sm:$0xf] %vm326_vm2, %v315_v19  ;;  %v275_v25 = vadd.f32 %v504_v22, %v255_v23  ;;  %v244_v26 = vld [vmem:[#allocation2 + $0x10] sm:$0xff] }
  0xa8   :  { %v303_v30 = vmax.f32 %v271_v15, %v287_v21  ;;  %v264_v31 = vadd.f32 %v504_v22, %v244_v26  ;;  %v248_v32 = vld [vmem:[#allocation2 + $0x30] sm:$0xff]  ;;  %233 = vst.msk [vmem:[#allocation2 + $0x50] sm:$0xff] %vm19_vm0, %v216_v16 }
  0xa9   :  { %v291_v33 = vmul.f32 0.2, %v275_v25  ;;  %v268_v34 = vadd.f32 %v504_v22, %v248_v32  ;;  %237 = vst.msk [vmem:[#allocation2 + $0x70] sm:$0xff] %vm19_vm0, %v220_v20  ;;  %v193_v35 = vpop.f32.mrf.mxu2  ;;  %v203_v36 = vpop.f32.mrf.mxu3 }
  0xaa   :  { %v319_v37 = vpack.c.bf16 %v303_v30, %v303_v30  ;;  %v280_v38 = vmul.f32 0.2, %v264_v31  ;;  %226 = vst.msk [vmem:[#allocation2 + $0x18] sm:$0xff] %vm19_vm0, %v209_v24  ;;  %v217_v39 = vadd.f32 %v193_v35, %v47_v28  ;;  %v221_v40 = vadd.f32 %v203_v36, %v51_v29 }
  0xab   :  { %v307_v41 = vmax.f32 %v275_v25, %v291_v33  ;;  %v284_v42 = vmul.f32 0.2, %v268_v34  ;;  %230 = vst.msk [vmem:[#allocation2 + $0x38] sm:$0xff] %vm19_vm0, %v213_v27 }
  0xac   :  { %336 = vst.msk [vmem:[%s603_s3 + $0x24] sm:$0xf] %vm326_vm2, %v319_v37  ;;  %v296_v43 = vmax.f32 %v264_v31, %v280_v38 }
  0xad   :  { %v323_v44 = vpack.c.bf16 %v307_v41, %v307_v41  ;;  %v300_v45 = vmax.f32 %v268_v34, %v284_v42  ;;  %234 = vst.msk [vmem:[#allocation2 + $0x58] sm:$0xff] %vm19_vm0, %v217_v39 }
  0xae   :  { %v312_v46 = vpack.c.bf16 %v296_v43, %v296_v43  ;;  %238 = vst.msk [vmem:[#allocation2 + $0x78] sm:$0xff] %vm19_vm0, %v221_v40 }
  0xaf   :  { %340 = vst.msk [vmem:[%s603_s3 + $0x34] sm:$0xf] %vm326_vm2, %v323_v44  ;;  %v316_v47 = vpack.c.bf16 %v300_v45, %v300_v45  ;;  %v252_v48 = vld [vmem:[#allocation2 + $0x50] sm:$0xff] }
  0xb0   :  { %329 = vst.msk [vmem:[%s603_s3 + $0x8] sm:$0xf] %vm326_vm2, %v312_v46  ;;  %v272_v49 = vadd.f32 %v504_v22, %v252_v48  ;;  %v256_v50 = vld [vmem:[#allocation2 + $0x70] sm:$0xff] }
  0xb1   :  { %333 = vst.msk [vmem:[%s603_s3 + $0x18] sm:$0xf] %vm326_vm2, %v316_v47  ;;  %v276_v51 = vadd.f32 %v504_v22, %v256_v50  ;;  %v245_v52 = vld [vmem:[#allocation2 + $0x18] sm:$0xff] }
  0xb2   :  { %v288_v53 = vmul.f32 0.2, %v272_v49  ;;  %v265_v54 = vadd.f32 %v504_v22, %v245_v52  ;;  %v249_v55 = vld [vmem:[#allocation2 + $0x38] sm:$0xff] }
  0xb3   :  { %v292_v56 = vmul.f32 0.2, %v276_v51  ;;  %v269_v57 = vadd.f32 %v504_v22, %v249_v55 }
  0xb4   :  { %v304_v58 = vmax.f32 %v272_v49, %v288_v53  ;;  %v281_v59 = vmul.f32 0.2, %v265_v54  ;;  %v253_v60 = vld [vmem:[#allocation2 + $0x58] sm:$0xff] }
  0xb5   :  { %v308_v61 = vmax.f32 %v276_v51, %v292_v56  ;;  %v285_v62 = vmul.f32 0.2, %v269_v57  ;;  %v273_v63 = vadd.f32 %v504_v22, %v253_v60  ;;  %v257_v0 = vld [vmem:[#allocation2 + $0x78] sm:$0xff] }
  0xb6   :  { %v320_v1 = vpack.c.bf16 %v304_v58, %v304_v58  ;;  %v297_v2 = vmax.f32 %v265_v54, %v281_v59  ;;  %v277_v3 = vadd.f32 %v504_v22, %v257_v0 }
  0xb7   :  { %v324_v4 = vpack.c.bf16 %v308_v61, %v308_v61  ;;  %v301_v5 = vmax.f32 %v269_v57, %v285_v62  ;;  %v289_v6 = vmul.f32 0.2, %v273_v63 }
  0xb8   :  { %337 = vst.msk [vmem:[%s603_s3 + $0x28] sm:$0xf] %vm326_vm2, %v320_v1  ;;  %v313_v7 = vpack.c.bf16 %v297_v2, %v297_v2  ;;  %v293_v8 = vmul.f32 0.2, %v277_v3 }
  0xb9   :  { %341 = vst.msk [vmem:[%s603_s3 + $0x38] sm:$0xf] %vm326_vm2, %v324_v4  ;;  %v317_v9 = vpack.c.bf16 %v301_v5, %v301_v5  ;;  %v305_v10 = vmax.f32 %v273_v63, %v289_v6 }
  0xba   :  { %330 = vst.msk [vmem:[%s603_s3 + $0xc] sm:$0xf] %vm326_vm2, %v313_v7  ;;  %v309_v22 = vmax.f32 %v277_v3, %v293_v8 }
  0xbb   :  { %334 = vst.msk [vmem:[%s603_s3 + $0x1c] sm:$0xf] %vm326_vm2, %v317_v9  ;;  %v321_v11 = vpack.c.bf16 %v305_v10, %v305_v10 }
  0xbc   :  { %v325_v12 = vpack.c.bf16 %v309_v22, %v309_v22 }
  0xbd   :  { %338 = vst.msk [vmem:[%s603_s3 + $0x2c] sm:$0xf] %vm326_vm2, %v321_v11 }
  0xbe   :  { %342 = vst.msk [vmem:[%s603_s3 + $0x3c] sm:$0xf] %vm326_vm2, %v325_v12 }

// kernel: discriminator_forward.3
= control target key start
LH: loop header
LB: loop body
LE: loop exit
PB: predicated region body
PF: predicated region fallthrough
CT: control target
= control target key end

     0   :  { %s1650_s20 = smov 0   ;;  %s1987_s0 = inlined_call_operand.vmem [shape: bf16[2,16,1024], index: 0, kind: input, shape index: {}]   ;;  %s1988_s1 = inlined_call_operand.vmem [shape: bf16[1024,128], index: 1, kind: input, shape index: {}]   ;;  %s1989_s2 = inlined_call_operand.vmem [shape: f32[1,128], index: 2, kind: input, shape index: {}]   ;;  %s1990_s3 = inlined_call_operand.vmem [shape: f32[16,128], index: 3, kind: input, shape index: {}]   ;;  %s1991_s4 = inlined_call_operand.<no memory space> [shape: f32[1,1], index: 4, kind: input, shape index: {}]   ;;  %s1992_s5 = inlined_call_operand.vmem [shape: f32[2,3,3], index: 5, kind: output, shape index: {}]  }
   0x1   :  { %v10_v0 = vstv %s1991_s4 }
   0x2   :  { %11 = vst [vmem:[#allocation3] sm:$0x1] %v10_v0 }
   0x3 LB: > { %s1216_s21 = sadd.s32 4294967295, %s1612_s20   ;;  %p1220_p0 = scmp.ge.s32.totalorder %s1612_s20, 1  ;;  %s1612_s20 = sphi %s1650_s20, %s17_s20  }
   0x4   : > { %p189_p1 = scmp.lt.s32.totalorder %s1612_s20, 3 }
   0x6   : > { %p190_p2 = pnand %p1220_p0, %p189_p1 }
   0x7   : > { %p216_p3 = scmp.lt.s32.totalorder (!%p190_p2), %s1216_s21, 1 }
   0x8   : > { %193 = sbr.rel (%p190_p2) target bundleno = 464 (0x1d0), region = 40 }
   0xd   : > { %v1530_v1 = vld [vmem:[%s1988_s1 + $0x38] sm:$0xff]  ;;  %v1529_v5 = vld [vmem:[%s1988_s1 + $0x30] sm:$0xff]  ;;  %v1528_v9 = vld [vmem:[%s1988_s1 + $0x28] sm:$0xff]  ;;  %s1994_s21 = smov (!%p216_p3, %s1216_s21), 1  ;;  %vm1128_vm4 = vcmask 1042432   ;;  %vm1156_vm5 = vcmask 1041409  }
   0xe   : > { %v1538_v2 = vld [vmem:[%s1988_s1 + $0x78] sm:$0xff]  ;;  %789 = vmatpush.bf16.msra.mxu0 %v1530_v1  ;;  %v1537_v6 = vld [vmem:[%s1988_s1 + $0x70] sm:$0xff]  ;;  %v1536_v10 = vld [vmem:[%s1988_s1 + $0x68] sm:$0xff]  ;;  %s1514_s22 = sshll.u32 %s1994_s21, 6  ;;  %s1223_s16 = sshll.u32 %s1994_s21, 2  ;;  %vm1158_vm6 = vcmask 1042434  }
   0xf   : > { %v1546_v3 = vld [vmem:[%s1988_s1 + $0xb8] sm:$0xff]  ;;  %803 = vmatpush.bf16.msra.mxu1 %v1538_v2  ;;  %v1545_v7 = vld [vmem:[%s1988_s1 + $0xb0] sm:$0xff]  ;;  %v1544_v11 = vld [vmem:[%s1988_s1 + $0xa8] sm:$0xff]  ;;  %s1752_s7 = scalar_lea.vmem %s1987_s0, %s1514_s22  ;;  %s224_s19 = scalar_lea.vmem %s1992_s5, %s1223_s16  ;;  %vm1161_vm7 = vcmask 18432  }
  0x10   : > { %v1554_v4 = vld [vmem:[%s1988_s1 + $0xf8] sm:$0xff]  ;;  %817 = vmatpush.bf16.msra.mxu2 %v1546_v3  ;;  %v1553_v8 = vld [vmem:[%s1988_s1 + $0xf0] sm:$0xff]  ;;  %v1552_v12 = vld [vmem:[%s1988_s1 + $0xe8] sm:$0xff] }
  0x11   : > { %831 = vmatpush.bf16.msra.mxu3 %v1554_v4  ;;  %v1527_v13 = vld [vmem:[%s1988_s1 + $0x20] sm:$0xff]  ;;  %v1526_v17 = vld [vmem:[%s1988_s1 + $0x18] sm:$0xff]  ;;  %v1525_v21 = vld [vmem:[%s1988_s1 + $0x10] sm:$0xff] }
  0x12   : > { %790 = vmatpush.bf16.msra.mxu0 %v1529_v5  ;;  %v1535_v14 = vld [vmem:[%s1988_s1 + $0x60] sm:$0xff]  ;;  %v1534_v18 = vld [vmem:[%s1988_s1 + $0x58] sm:$0xff]  ;;  %v1533_v22 = vld [vmem:[%s1988_s1 + $0x50] sm:$0xff] }
  0x13   : > { %804 = vmatpush.bf16.msra.mxu1 %v1537_v6  ;;  %v1543_v15 = vld [vmem:[%s1988_s1 + $0xa0] sm:$0xff]  ;;  %v1542_v19 = vld [vmem:[%s1988_s1 + $0x98] sm:$0xff]  ;;  %v1541_v23 = vld [vmem:[%s1988_s1 + $0x90] sm:$0xff] }
  0x14   : > { %818 = vmatpush.bf16.msra.mxu2 %v1545_v7  ;;  %v1551_v16 = vld [vmem:[%s1988_s1 + $0xe0] sm:$0xff]  ;;  %v1550_v20 = vld [vmem:[%s1988_s1 + $0xd8] sm:$0xff]  ;;  %v1549_v24 = vld [vmem:[%s1988_s1 + $0xd0] sm:$0xff] }
  0x15   : > { %832 = vmatpush.bf16.msra.mxu3 %v1553_v8  ;;  %v1524_v25 = vld [vmem:[%s1988_s1 + $0x8] sm:$0xff]  ;;  %v1523_v29 = vld [vmem:[%s1988_s1] sm:$0xff]  ;;  %v1562_v33 = vld [vmem:[%s1988_s1 + $0x138] sm:$0xff] }
  0x16   : > { %791 = vmatpush.bf16.msra.mxu0 %v1528_v9  ;;  %v1532_v26 = vld [vmem:[%s1988_s1 + $0x48] sm:$0xff]  ;;  %v1531_v30 = vld [vmem:[%s1988_s1 + $0x40] sm:$0xff]  ;;  %v1570_v34 = vld [vmem:[%s1988_s1 + $0x178] sm:$0xff] }
  0x17   : > { %805 = vmatpush.bf16.msra.mxu1 %v1536_v10  ;;  %v1540_v27 = vld [vmem:[%s1988_s1 + $0x88] sm:$0xff]  ;;  %v1539_v31 = vld [vmem:[%s1988_s1 + $0x80] sm:$0xff]  ;;  %v1578_v43 = vld [vmem:[%s1988_s1 + $0x1b8] sm:$0xff] }
  0x18   : > { %819 = vmatpush.bf16.msra.mxu2 %v1544_v11  ;;  %v1548_v28 = vld [vmem:[%s1988_s1 + $0xc8] sm:$0xff]  ;;  %v1547_v32 = vld [vmem:[%s1988_s1 + $0xc0] sm:$0xff]  ;;  %v1586_v44 = vld [vmem:[%s1988_s1 + $0x1f8] sm:$0xff] }
  0x19   : > { %833 = vmatpush.bf16.msra.mxu3 %v1552_v12  ;;  %v1234_v35 = vld [vmem:[%s1752_s7 + $0x8] sm:$0xf]  ;;  %v1226_v37 = vld [vmem:[%s1752_s7] sm:$0xf]  ;;  %v1516_v39 = vld [vmem:[%s1752_s7 + $0xc] sm:$0xf] }
  0x1a   : > { %792 = vmatpush.bf16.msra.mxu0 %v1527_v13  ;;  %v1520_v36 = vld [vmem:[%s1752_s7 + $0x24] sm:$0xf0]  ;;  %v1519_v38 = vld [vmem:[%s1752_s7 + $0x1c] sm:$0xf0]  ;;  %v1236_v40 = vld [vmem:[%s1752_s7 + $0x28] sm:$0xf0] }
  0x1b   : > { %806 = vmatpush.bf16.msra.mxu1 %v1535_v14  ;;  %v1515_v41 = vld [vmem:[%s1752_s7 + $0x4] sm:$0xf]  ;;  %v1235_v45 = vor.u32 %v1520_v36, %v1234_v35  ;;  %v1227_v46 = vor.u32 %v1519_v38, %v1226_v37  ;;  %v1239_v47 = vor.u32 %v1516_v39, %v1236_v40  ;;  %v1561_v49 = vld [vmem:[%s1988_s1 + $0x130] sm:$0xff]  ;;  %v1560_v53 = vld [vmem:[%s1988_s1 + $0x128] sm:$0xff] }
  0x1c   : > { %820 = vmatpush.bf16.msra.mxu2 %v1543_v15  ;;  %v1228_v42 = vld [vmem:[%s1752_s7 + $0x20] sm:$0xf0]  ;;  %v1569_v50 = vld [vmem:[%s1988_s1 + $0x170] sm:$0xff]  ;;  %v1568_v54 = vld [vmem:[%s1988_s1 + $0x168] sm:$0xff] }
  0x1d   : > { %834 = vmatpush.bf16.msra.mxu3 %v1551_v16  ;;  %v1231_v48 = vor.u32 %v1515_v41, %v1228_v42  ;;  %v1577_v51 = vld [vmem:[%s1988_s1 + $0x1b0] sm:$0xff]  ;;  %v1576_v55 = vld [vmem:[%s1988_s1 + $0x1a8] sm:$0xff]  ;;  %v1559_v57 = vld [vmem:[%s1988_s1 + $0x120] sm:$0xff] }
  0x1e   : > { %793 = vmatpush.bf16.msra.mxu0 %v1526_v17  ;;  %v1585_v52 = vld [vmem:[%s1988_s1 + $0x1f0] sm:$0xff]  ;;  %v1584_v56 = vld [vmem:[%s1988_s1 + $0x1e8] sm:$0xff]  ;;  %v1567_v58 = vld [vmem:[%s1988_s1 + $0x160] sm:$0xff] }
  0x1f   : > { %807 = vmatpush.bf16.msra.mxu1 %v1534_v18  ;;  %v1575_v59 = vld [vmem:[%s1988_s1 + $0x1a0] sm:$0xff]  ;;  %v1558_v61 = vld [vmem:[%s1988_s1 + $0x118] sm:$0xff]  ;;  %v1557_v1 = vld [vmem:[%s1988_s1 + $0x110] sm:$0xff] }
  0x20   : > { %821 = vmatpush.bf16.msra.mxu2 %v1542_v19  ;;  %v1583_v60 = vld [vmem:[%s1988_s1 + $0x1e0] sm:$0xff]  ;;  %v1566_v62 = vld [vmem:[%s1988_s1 + $0x158] sm:$0xff]  ;;  %v1565_v2 = vld [vmem:[%s1988_s1 + $0x150] sm:$0xff] }
  0x21   : > { %835 = vmatpush.bf16.msra.mxu3 %v1550_v20  ;;  %v1574_v63 = vld [vmem:[%s1988_s1 + $0x198] sm:$0xff]  ;;  %v1573_v3 = vld [vmem:[%s1988_s1 + $0x190] sm:$0xff]  ;;  %v1556_v5 = vld [vmem:[%s1988_s1 + $0x108] sm:$0xff] }
  0x22   : > { %794 = vmatpush.bf16.msra.mxu0 %v1525_v21  ;;  %v1582_v0 = vld [vmem:[%s1988_s1 + $0x1d8] sm:$0xff]  ;;  %v1581_v4 = vld [vmem:[%s1988_s1 + $0x1d0] sm:$0xff]  ;;  %v1564_v6 = vld [vmem:[%s1988_s1 + $0x148] sm:$0xff] }
  0x23   : > { %808 = vmatpush.bf16.msra.mxu1 %v1533_v22  ;;  %v1572_v7 = vld [vmem:[%s1988_s1 + $0x188] sm:$0xff]  ;;  %v1555_v9 = vld [vmem:[%s1988_s1 + $0x100] sm:$0xff]  ;;  %v1242_v13 = vld [vmem:[%s1752_s7 + $0x10] sm:$0xf] }
  0x24   : > { %822 = vmatpush.bf16.msra.mxu2 %v1541_v23  ;;  %v1580_v8 = vld [vmem:[%s1988_s1 + $0x1c8] sm:$0xff]  ;;  %v1563_v10 = vld [vmem:[%s1988_s1 + $0x140] sm:$0xff]  ;;  %v1521_v14 = vld [vmem:[%s1752_s7 + $0x2c] sm:$0xf0] }
  0x25   : > { %836 = vmatpush.bf16.msra.mxu3 %v1549_v24  ;;  %v1571_v11 = vld [vmem:[%s1988_s1 + $0x180] sm:$0xff]  ;;  %v1517_v15 = vld [vmem:[%s1752_s7 + $0x14] sm:$0xf]  ;;  %v1250_v17 = vld [vmem:[%s1752_s7 + $0x18] sm:$0xf]  ;;  %v1243_v21 = vor.u32 %v1521_v14, %v1242_v13 }
  0x26   : > { %795 = vmatpush.bf16.msra.mxu0 %v1524_v25  ;;  %v1579_v12 = vld [vmem:[%s1988_s1 + $0x1c0] sm:$0xff]  ;;  %v1244_v16 = vld [vmem:[%s1752_s7 + $0x30] sm:$0xf0]  ;;  %v1522_v18 = vld [vmem:[%s1752_s7 + $0x34] sm:$0xf0] }
  0x27   : > { %809 = vmatpush.bf16.msra.mxu1 %v1532_v26  ;;  %v1518_v19 = vld [vmem:[%s1752_s7 + $0x1c] sm:$0xf]  ;;  %v1247_v22 = vor.u32 %v1517_v15, %v1244_v16  ;;  %v1251_v23 = vor.u32 %v1522_v18, %v1250_v17 }
  0x28   : > { %823 = vmatpush.bf16.msra.mxu2 %v1540_v27  ;;  %v1252_v20 = vld [vmem:[%s1752_s7 + $0x38] sm:$0xf0]  ;;  %v1600_v27 = vld [vmem:[%s1989_s2] ss:$0 sm:$0xff] }
  0x29   : > { %837 = vmatpush.bf16.msra.mxu3 %v1548_v28  ;;  %v1255_v24 = vor.u32 %v1518_v19, %v1252_v20 }
  0x2a   : > { %796 = vmatpush.bf16.msra.mxu0 %v1523_v29 }
  0x2b   : > { %810 = vmatpush.bf16.msra.mxu1 %v1531_v30 }
  0x2c   : > { %824 = vmatpush.bf16.msra.mxu2 %v1539_v31 }
  0x2d   : > { %838 = vmatpush.bf16.msra.mxu3 %v1547_v32  ;;  %797 = vmatmul.bf16.vlgmr.msra.gmra.mxu0 %v1227_v46 }
  0x2e   : > { %845 = vmatpush.bf16.msrb.mxu0 %v1562_v33  ;;  %811 = vmatmul.bf16.vlgmr.msra.gmra.mxu1 %v1231_v48 }
  0x2f   : > { %859 = vmatpush.bf16.msrb.mxu1 %v1570_v34  ;;  %825 = vmatmul.bf16.vlgmr.msra.gmra.mxu2 %v1235_v45 }
  0x30   : > { %873 = vmatpush.bf16.msrb.mxu2 %v1578_v43  ;;  %839 = vmatmul.bf16.vlgmr.msra.gmra.mxu3 %v1239_v47 }
  0x31   : > { %887 = vmatpush.bf16.msrb.mxu3 %v1586_v44  ;;  %v1614_v44 = vmov 16.0  }
  0x32   : > { %846 = vmatpush.bf16.msrb.mxu0 %v1561_v49  ;;  %1602 = vrcp.f32 %v1614_v44 }
  0x33   : > { %860 = vmatpush.bf16.msrb.mxu1 %v1569_v50 }
  0x34   : > { %874 = vmatpush.bf16.msrb.mxu2 %v1577_v51 }
  0x35   : > { %888 = vmatpush.bf16.msrb.mxu3 %v1585_v52 }
  0x36   : > { %847 = vmatpush.bf16.msrb.mxu0 %v1560_v53 }
  0x37   : > { %861 = vmatpush.bf16.msrb.mxu1 %v1568_v54 }
  0x38   : > { %875 = vmatpush.bf16.msrb.mxu2 %v1576_v55  ;;  %v1603_v51 = vpop.eup %1602 }
  0x39   : > { %889 = vmatpush.bf16.msrb.mxu3 %v1584_v56  ;;  %v909_v56 = vmul.f32 16.0, %v1603_v51  ;;  %vm913_vm0 = vweird.f32 %v1603_v51 }
  0x3a   : > { %848 = vmatpush.bf16.msrb.mxu0 %v1559_v57 }
  0x3b   : > { %862 = vmatpush.bf16.msrb.mxu1 %v1567_v58 }
  0x3c   : > { %876 = vmatpush.bf16.msrb.mxu2 %v1575_v59 }
  0x3d   : > { %890 = vmatpush.bf16.msrb.mxu3 %v1583_v60 }
  0x3e   : > { %849 = vmatpush.bf16.msrb.mxu0 %v1558_v61  ;;  %v910_v61 = vsub.f32 1.0, %v909_v56 }
  0x3f   : > { %863 = vmatpush.bf16.msrb.mxu1 %v1566_v62 }
  0x40   : > { %877 = vmatpush.bf16.msrb.mxu2 %v1574_v63 }
  0x41   : > { %891 = vmatpush.bf16.msrb.mxu3 %v1582_v0 }
  0x42   : > { %850 = vmatpush.bf16.msrb.mxu0 %v1557_v1 }
  0x43   : > { %864 = vmatpush.bf16.msrb.mxu1 %v1565_v2 }
  0x44   : > { %878 = vmatpush.bf16.msrb.mxu2 %v1573_v3  ;;  %v911_v3 = vmul.f32 %v1603_v51, %v910_v61 }
  0x45   : > { %892 = vmatpush.bf16.msrb.mxu3 %v1581_v4 }
  0x46   : > { %851 = vmatpush.bf16.msrb.mxu0 %v1556_v5 }
  0x47   : > { %865 = vmatpush.bf16.msrb.mxu1 %v1564_v6 }
  0x48   : > { %879 = vmatpush.bf16.msrb.mxu2 %v1572_v7 }
  0x49   : > { %893 = vmatpush.bf16.msrb.mxu3 %v1580_v8  ;;  %v912_v8 = vadd.f32 %v1603_v51, %v911_v3 }
  0x4a   : > { %852 = vmatpush.bf16.msrb.mxu0 %v1555_v9 }
  0x4b   : > { %866 = vmatpush.bf16.msrb.mxu1 %v1563_v10  ;;  %v914_v14 = vsel %vm913_vm0, %v1603_v51, %v912_v8 }
  0x4c   : > { %880 = vmatpush.bf16.msrb.mxu2 %v1571_v11  ;;  %v1615_v11 = vmov 0.0  }
  0x4d   : > { %894 = vmatpush.bf16.msrb.mxu3 %v1579_v12  ;;  %853 = vmatmul.bf16.vlgmr.msrb.gmra.mxu0 %v1243_v21  ;;  %947 = vst [vmem:[#allocation2] sm:$0x3f] %v1615_v11 }
  0x4e   : > { %867 = vmatmul.bf16.vlgmr.msrb.gmra.mxu1 %v1247_v22  ;;  %948 = vst [vmem:[#allocation2 + $0x8] sm:$0x3f] %v1615_v11 }
  0x4f   : > { %881 = vmatmul.bf16.vlgmr.msrb.gmra.mxu2 %v1251_v23  ;;  %949 = vst [vmem:[#allocation2 + $0x10] sm:$0x3f] %v1615_v11 }
  0x50   : > { %895 = vmatmul.bf16.vlgmr.msrb.gmra.mxu3 %v1255_v24  ;;  %950 = vst [vmem:[#allocation2 + $0x18] sm:$0x3f] %v1615_v11 }
  0x51   : > { %951 = vst [vmem:[#allocation2 + $0x20] sm:$0x3f] %v1615_v11 }
  0x52   : > { %952 = vst [vmem:[#allocation2 + $0x28] sm:$0x3f] %v1615_v11 }
  0xaa   : > { %v798_v25 = vpop.f32.mrf.mxu0 }
  0xab   : > { %v812_v26 = vpop.f32.mrf.mxu1  ;;  %v799_v30 = vadd.f32 %v1600_v27, %v798_v25 }
  0xad   : > { %v813_v33 = vadd.f32 %v812_v26, %v799_v30  ;;  %v964_v26 = vld [vmem:[%s1990_s3] sm:$0xff] }
  0xae   : > { %v966_v30 = vld [vmem:[#allocation2] sm:$0x7]  ;;  %v1901_v61 = vperm.slane %v964_v26, 6  ;;  %v1909_v3 = vperm.slane %v964_v26, 7 }
  0xb2   : > { %v826_v28 = vpop.f32.mrf.mxu2  ;;  %v800_v31 = vpop.f32.mrf.mxu0 }
  0xb3   : > { %v840_v29 = vpop.f32.mrf.mxu3  ;;  %v814_v32 = vpop.f32.mrf.mxu1  ;;  %v801_v34 = vadd.f32 %v1600_v27, %v800_v31  ;;  %v827_v37 = vadd.f32 %v826_v28, %v813_v33  ;;  %v1886_v31 = vperm.slane %v964_v26, 1  ;;  %v976_v33 = vld [vmem:[#allocation2 + $0x1] sm:$0x7] }
  0xb5   : > { %v815_v38 = vadd.f32 %v814_v32, %v801_v34  ;;  %v841_v41 = vadd.f32 %v840_v29, %v827_v37  ;;  %v1884_v29 = vperm.slane %v964_v26, 0 }
  0xb7   : > { %v970_v37 = vmul.f32 %v1884_v29, %v966_v30 }
  0xba   : > { %v828_v35 = vpop.f32.mrf.mxu2 }
  0xbb   : > { %v842_v36 = vpop.f32.mrf.mxu3  ;;  %v829_v42 = vadd.f32 %v828_v35, %v815_v38 }
  0xbd   : > { %v843_v47 = vadd.f32 %v842_v36, %v829_v42  ;;  %v986_v42 = vld [vmem:[#allocation2 + $0x2] sm:$0x7] }
  0xca   : > { %v854_v39 = vpop.f32.mrf.mxu0 }
  0xcb   : > { %v868_v40 = vpop.f32.mrf.mxu1  ;;  %v855_v43 = vadd.f32 %v854_v39, %v841_v41  ;;  %v1890_v41 = vperm.slane %v964_v26, 2 }
  0xcd   : > { %v869_v49 = vadd.f32 %v868_v40, %v855_v43  ;;  %v980_v40 = vmul.f32 %v1886_v31, %v976_v33 }
  0xd2   : > { %v882_v45 = vpop.f32.mrf.mxu2  ;;  %v856_v48 = vpop.f32.mrf.mxu0 }
  0xd3   : > { %v896_v46 = vpop.f32.mrf.mxu3  ;;  %v857_v50 = vadd.f32 %v856_v48, %v843_v47  ;;  %v883_v52 = vadd.f32 %v882_v45, %v869_v49  ;;  %v870_v53 = vpop.f32.mrf.mxu1  ;;  %v1892_v45 = vperm.slane %v964_v26, 3  ;;  %v983_v48 = vadd.f32 %v980_v40, %v970_v37 }
  0xd4   : > { %v990_v49 = vmul.f32 %v1890_v41, %v986_v42 }
  0xd5   : > { %v871_v54 = vadd.f32 %v870_v53, %v857_v50  ;;  %v897_v57 = vadd.f32 %v896_v46, %v883_v52  ;;  %v996_v50 = vld [vmem:[#allocation2 + $0x3] sm:$0x7] }
  0xd6   : > { %v993_v53 = vadd.f32 %v990_v49, %v983_v48 }
  0xd7   : > { %v916_v62 = vmul.f32 %v897_v57, %v897_v57 }
  0xda   : > { %v884_v55 = vpop.f32.mrf.mxu2 }
  0xdb   : > { %v885_v58 = vadd.f32 %v884_v55, %v871_v54  ;;  %v898_v59 = vpop.f32.mrf.mxu3  ;;  %v1000_v54 = vmul.f32 %v1892_v45, %v996_v50  ;;  %v1896_v55 = vperm.slane %v964_v26, 4 }
  0xdd   : > { %v899_v60 = vadd.f32 %v898_v59, %v885_v58  ;;  %v1003_v56 = vadd.f32 %v1000_v54, %v993_v53 }
  0xdf   : > { %v901_v63 = vadd.f32 %v899_v60, %v897_v57  ;;  %v917_v0 = vmul.f32 %v899_v60, %v899_v60 }
  0xe1   : > { %v902_v1 = vrot.slane %v901_v63, 4  ;;  %v918_v2 = vadd.f32 %v917_v0, %v916_v62 }
  0xe3   : > { %v903_v4 = vadd.f32 %v902_v1, %v901_v63  ;;  %v919_v5 = vrot.slane %v918_v2, 4  ;;  %v1906_v63 = vld [vmem:[%s1990_s3 + $0x8] sm:$0xff] }
  0xe4   : > { %v1932_v42 = vperm.slane %v1906_v63, 3 }
  0xe5   : > { %v904_v6 = vrot.slane %v903_v4, 2  ;;  %v920_v7 = vadd.f32 %v919_v5, %v918_v2 }
  0xe7   : > { %v905_v9 = vadd.f32 %v904_v6, %v903_v4  ;;  %v921_v10 = vrot.slane %v920_v7, 2 }
  0xe9   : > { %v906_v12 = vrot.slane %v905_v9, 1  ;;  %v922_v13 = vadd.f32 %v921_v10, %v920_v7 }
  0xeb   : > { %v907_v15 = vadd.f32 %v906_v12, %v905_v9  ;;  %v923_v16 = vrot.slane %v922_v13, 1  ;;  %v1915_v12 = vperm.slane %v1906_v63, 0 }
  0xed   : > { %v915_v17 = vmul.f32 %v914_v14, %v907_v15  ;;  %v924_v18 = vadd.f32 %v923_v16, %v922_v13 }
  0xef   : > { %v925_v19 = vmul.f32 %v924_v18, %v914_v14  ;;  %v926_v20 = vmul.f32 %v915_v17, %v915_v17  ;;  %v928_v34 = vsub.f32 %v897_v57, %v915_v17  ;;  %v929_v35 = vsub.f32 %v899_v60, %v915_v17 }
  0xf0   : > { %v1898_v57 = vperm.slane %v964_v26, 5 }
  0xf1   : > { %v927_v21 = vsub.f32 %v925_v19, %v926_v20  ;;  %v1920_v19 = vperm.slane %v1906_v63, 1  ;;  %v1923_v20 = vperm.slane %v1906_v63, 2 }
  0xf3   : > { %v930_v22 = vadd.f32 1e-05, %v927_v21 }
  0xf5   : > { %1604 = vrsqrt.f32 %v930_v22  ;;  %vm937_vm2 = vweird.f32 %v930_v22 }
  0xfb   : > { %v1605_v23 = vpop.eup %1604 }
  0xfc   : > { %v932_v24 = vmul.f32 %v1605_v23, %v930_v22  ;;  %vm938_vm1 = vweird.f32 %v1605_v23 }
  0xfd   : > { %vm939_vm3 = vmor %vm937_vm2, %vm938_vm1 }
  0xfe   : > { %v933_v25 = vmul.f32 %v1605_v23, %v932_v24 }
 0x100   : > { %v934_v27 = vmul.f32 0.5, %v933_v25 }
 0x102   : > { %v935_v28 = vsub.f32 1.5, %v934_v27 }
 0x104   : > { %v936_v32 = vmul.f32 %v1605_v23, %v935_v28 }
 0x106   : > { %v940_v36 = vsel %vm939_vm3, %v1605_v23, %v936_v32 }
 0x107   : > { %v941_v38 = vmul.f32 %v940_v36, %v928_v34  ;;  %v942_v39 = vmul.f32 %v940_v36, %v929_v35 }
 0x109   : > { %v943_v43 = vmul.f32 0.2, %v941_v38  ;;  %v944_v44 = vmul.f32 0.2, %v942_v39 }
 0x10b   : > { %v945_v46 = vmax.f32 %v941_v38, %v943_v43  ;;  %v946_v47 = vmax.f32 %v942_v39, %v944_v44  ;;  %v1935_v43 = vperm.slane %v1906_v63, 4 }
 0x10d   : > { %v955_v51 = vrot.slane %v945_v46, 4  ;;  %v956_v52 = vrot.slane %v946_v47, 4  ;;  %960 = vst [vmem:[#allocation2 + $0x9] sm:$0xf] %v945_v46 }
 0x10e   : > { %962 = vst [vmem:[#allocation2 + $0x19] sm:$0xf] %v946_v47 }
 0x10f   : > { %961 = vst [vmem:[#allocation2 + $0x11] sm:$0xf] %v955_v51 }
 0x110   : > { %963 = vst [vmem:[#allocation2 + $0x21] sm:$0xf] %v956_v52  ;;  %v1941_v52 = vperm.slane %v1906_v63, 5 }
 0x114   : > { %v1006_v58 = vld [vmem:[#allocation2 + $0x8] sm:$0x7]  ;;  %v1036_v2 = vld [vmem:[#allocation2 + $0xb] sm:$0x7] }
 0x115   : > { %v1016_v59 = vld [vmem:[#allocation2 + $0x9] sm:$0x7]  ;;  %v1010_v60 = vmul.f32 %v1896_v55, %v1006_v58  ;;  %v1040_v15 = vmul.f32 %v1909_v3, %v1036_v2  ;;  %v1088_v48 = vld [vmem:[#allocation2 + $0x18] sm:$0x7] }
 0x116   : > { %v1026_v62 = vld [vmem:[#allocation2 + $0xa] sm:$0x7]  ;;  %v1020_v1 = vmul.f32 %v1898_v57, %v1016_v59  ;;  %v1047_v11 = vld [vmem:[#allocation2 + $0x10] sm:$0x7]  ;;  %v998_v39 = vld [vmem:[#allocation2 + $0x13] sm:$0x7] }
 0x117   : > { %v1013_v0 = vadd.f32 %v1010_v60, %v1003_v56  ;;  %v967_v4 = vld [vmem:[#allocation2 + $0x8] sm:$0x7]  ;;  %v1030_v8 = vmul.f32 %v1901_v61, %v1026_v62  ;;  %v997_v13 = vld [vmem:[#allocation2 + $0xb] sm:$0x7]  ;;  %v1057_v18 = vld [vmem:[#allocation2 + $0x11] sm:$0x7]  ;;  %v1051_v23 = vmul.f32 %v1915_v12, %v1047_v11  ;;  %v1002_v56 = vmul.f32 %v1892_v45, %v998_v39 }
 0x118   : > { %v977_v5 = vld [vmem:[#allocation2 + $0x9] sm:$0x7]  ;;  %v971_v9 = vmul.f32 %v1884_v29, %v967_v4  ;;  %v1007_v21 = vld [vmem:[#allocation2 + $0x10] sm:$0x7]  ;;  %v1001_v25 = vmul.f32 %v1892_v45, %v997_v13  ;;  %v1061_v36 = vmul.f32 %v1920_v19, %v1057_v18  ;;  %v1077_v40 = vld [vmem:[#allocation2 + $0x13] sm:$0x7] }
 0x119   : > { %v987_v6 = vld [vmem:[#allocation2 + $0xa] sm:$0x7]  ;;  %v1023_v7 = vadd.f32 %v1020_v1, %v1013_v0  ;;  %v981_v10 = vmul.f32 %v1886_v31, %v977_v5  ;;  %v968_v26 = vld [vmem:[#allocation2 + $0x10] sm:$0x7]  ;;  %v1011_v38 = vmul.f32 %v1896_v55, %v1007_v21  ;;  %v1008_v51 = vld [vmem:[#allocation2 + $0x18] sm:$0x7]  ;;  %v1081_v59 = vmul.f32 %v1932_v42, %v1077_v40 }
 0x11a   : > { %v991_v17 = vmul.f32 %v1890_v41, %v987_v6  ;;  %v978_v27 = vld [vmem:[#allocation2 + $0x11] sm:$0x7]  ;;  %v972_v32 = vmul.f32 %v1884_v29, %v968_v26  ;;  %v1018_v62 = vld [vmem:[#allocation2 + $0x19] sm:$0x7]  ;;  %v1092_v0 = vmul.f32 %v1935_v43, %v1088_v48  ;;  %v1012_v5 = vmul.f32 %v1896_v55, %v1008_v51  ;;  %v1059_v39 = vld [vmem:[#allocation2 + $0x21] sm:$0x7] }
 0x11b   : > { %v1033_v14 = vadd.f32 %v1030_v8, %v1023_v7  ;;  %v984_v16 = vadd.f32 %v981_v10, %v971_v9  ;;  %v1067_v28 = vld [vmem:[#allocation2 + $0x12] sm:$0x7]  ;;  %v982_v33 = vmul.f32 %v1886_v31, %v978_v27  ;;  %v1098_v1 = vld [vmem:[#allocation2 + $0x19] sm:$0x7]  ;;  %v1949_v7 = vperm.slane %v1906_v63, 6 }
 0x11c   : > { %v1017_v30 = vld [vmem:[#allocation2 + $0x11] sm:$0x7]  ;;  %v1071_v47 = vmul.f32 %v1923_v20, %v1067_v28  ;;  %v1048_v2 = vld [vmem:[#allocation2 + $0x18] sm:$0x7]  ;;  %v1616_v10 = vmov 0   ;;  %v1953_v13 = vperm.slane %v1906_v63, 7 }
 0x11d   : > { %v1043_v22 = vadd.f32 %v1040_v15, %v1033_v14  ;;  %v994_v24 = vadd.f32 %v991_v17, %v984_v16  ;;  %v988_v34 = vld [vmem:[#allocation2 + $0x12] sm:$0x7]  ;;  %v985_v46 = vadd.f32 %v982_v33, %v972_v32  ;;  %v1021_v50 = vmul.f32 %v1898_v57, %v1017_v30  ;;  %v1028_v9 = vld [vmem:[#allocation2 + $0x1a] sm:$0x7]  ;;  %1598 = vset.pattern.permute.xlu1 %v1616_v10  ;;  %v1049_v32 = vld [vmem:[#allocation2 + $0x20] sm:$0x7] }
 0x11e   : > { %v1027_v44 = vld [vmem:[#allocation2 + $0x12] sm:$0x7]  ;;  %v992_v29 = vmul.f32 %v1890_v41, %v988_v34  ;;  %1599 = vset.pattern.permute.xlu0 %v1616_v10  ;;  %v1108_v11 = vld [vmem:[#allocation2 + $0x1a] sm:$0x7]  ;;  %v1022_v16 = vmul.f32 %v1898_v57, %v1018_v62  ;;  %v1102_v17 = vmul.f32 %v1941_v52, %v1098_v1  ;;  %v1052_v21 = vmul.f32 %v1915_v12, %v1048_v2  ;;  %v1099_v48 = vld [vmem:[#allocation2 + $0x21] sm:$0x7] }
 0x11f   : > { %v1054_v35 = vadd.f32 %v1051_v23, %v1043_v22  ;;  %v1004_v37 = vadd.f32 %v1001_v25, %v994_v24  ;;  %v1037_v53 = vld [vmem:[#allocation2 + $0x13] sm:$0x7]  ;;  %v1031_v41 = vmul.f32 %v1901_v61, %v1027_v44  ;;  %v1058_v14 = vld [vmem:[#allocation2 + $0x19] sm:$0x7]  ;;  %v1032_v26 = vmul.f32 %v1901_v61, %v1028_v9  ;;  %v1089_v61 = vld [vmem:[#allocation2 + $0x20] sm:$0x7] }
 0x120   : > { %v995_v54 = vadd.f32 %v992_v29, %v985_v46  ;;  %v1041_v45 = vmul.f32 %v1909_v3, %v1037_v53  ;;  %v1038_v22 = vld [vmem:[#allocation2 + $0x1b] sm:$0x7]  ;;  %v1112_v63 = vmul.f32 %v1949_v7, %v1108_v11  ;;  %v1062_v30 = vmul.f32 %v1920_v19, %v1058_v14  ;;  %v1100_v62 = vld [vmem:[#allocation2 + $0x29] sm:$0x7] }
 0x121   : > { %v1064_v31 = vadd.f32 %v1061_v36, %v1054_v35  ;;  %v1014_v49 = vadd.f32 %v1011_v38, %v1004_v37  ;;  %v1118_v23 = vld [vmem:[#allocation2 + $0x1b] sm:$0x7]  ;;  %v1042_v34 = vmul.f32 %v1909_v3, %v1038_v22  ;;  %v1053_v44 = vmul.f32 %v1915_v12, %v1049_v32  ;;  %v1120_v10 = vld [vmem:[#allocation2 + $0x2b] sm:$0x7] }
 0x122   : > { %v1005_v4 = vadd.f32 %v1002_v56, %v995_v54  ;;  %v1068_v24 = vld [vmem:[#allocation2 + $0x1a] sm:$0x7]  ;;  %v1122_v36 = vmul.f32 %v1953_v13, %v1118_v23  ;;  %v1063_v3 = vmul.f32 %v1920_v19, %v1059_v39  ;;  %v1093_v53 = vmul.f32 %v1935_v43, %v1089_v61  ;;  %v1079_v54 = vld [vmem:[#allocation2 + $0x23] sm:$0x7]  ;;  %v1090_v56 = vld [vmem:[#allocation2 + $0x28] sm:$0x7] }
 0x123   : > { %v1074_v58 = vadd.f32 %v1071_v47, %v1064_v31  ;;  %v1024_v60 = vadd.f32 %v1021_v50, %v1014_v49  ;;  %v1078_v57 = vld [vmem:[#allocation2 + $0x1b] sm:$0x7]  ;;  %v1072_v38 = vmul.f32 %v1923_v20, %v1068_v24  ;;  %v1069_v47 = vld [vmem:[#allocation2 + $0x22] sm:$0x7]  ;;  %v1083_v19 = vmul.f32 %v1932_v42, %v1079_v54 }
 0x124   : > { %v1015_v15 = vadd.f32 %v1012_v5, %v1005_v4  ;;  %v1082_v31 = vmul.f32 %v1932_v42, %v1078_v57  ;;  %v1073_v12 = vmul.f32 %v1923_v20, %v1069_v47  ;;  %v1094_v2 = vmul.f32 %v1935_v43, %v1090_v56 }
 0x125   : > { %v1084_v6 = vadd.f32 %v1081_v59, %v1074_v58  ;;  %v1034_v8 = vadd.f32 %v1031_v41, %v1024_v60  ;;  %v1109_v58 = vld [vmem:[#allocation2 + $0x22] sm:$0x7]  ;;  %v1103_v41 = vmul.f32 %v1941_v52, %v1099_v48  ;;  %v1124_v42 = vmul.f32 %v1953_v13, %v1120_v10 }
 0x126   : > { %v1025_v25 = vadd.f32 %v1022_v16, %v1015_v15  ;;  %v1113_v5 = vmul.f32 %v1949_v7, %v1109_v58  ;;  %v1151_v23 = vlaneseq }
 0x127   : > { %v1095_v55 = vadd.f32 %v1092_v0, %v1084_v6  ;;  %v1044_v18 = vadd.f32 %v1041_v45, %v1034_v8  ;;  %v1119_v0 = vld [vmem:[#allocation2 + $0x23] sm:$0x7]  ;;  %v1110_v6 = vld [vmem:[#allocation2 + $0x2a] sm:$0x7]  ;;  %v1104_v45 = vmul.f32 %v1941_v52, %v1100_v62  ;;  %v1601_v52 = vld [vmem:[#allocation3] ss:$0 sm:$0xff] }
 0x128   : > { %v1035_v33 = vadd.f32 %v1032_v26, %v1025_v25  ;;  %v1123_v20 = vmul.f32 %v1953_v13, %v1119_v0  ;;  %v1114_v14 = vmul.f32 %v1949_v7, %v1110_v6  ;;  %v1152_v24 = vand.u32 127, %v1151_v23 }
 0x129   : > { %v1105_v27 = vadd.f32 %v1102_v17, %v1095_v55  ;;  %v1055_v28 = vadd.f32 %v1052_v21, %v1044_v18 }
 0x12a   : > { %v1045_v40 = vadd.f32 %v1042_v34, %v1035_v33 }
 0x12b   : > { %v1115_v35 = vadd.f32 %v1112_v63, %v1105_v27  ;;  %v1065_v37 = vadd.f32 %v1062_v30, %v1055_v28 }
 0x12c   : > { %v1056_v49 = vadd.f32 %v1053_v44, %v1045_v40 }
 0x12d   : > { %v1125_v46 = vadd.f32 %v1122_v36, %v1115_v35  ;;  %v1075_v29 = vadd.f32 %v1072_v38, %v1065_v37 }
 0x12e   : > { %v1066_v59 = vadd.f32 %v1063_v3, %v1056_v49 }
 0x12f   : > { %v1129_v50 = vsel %vm1128_vm4, %v1125_v46, 0.0  ;;  %v1085_v51 = vadd.f32 %v1082_v31, %v1075_v29 }
 0x130   : > { %1130 = vadd.xlane.f32.xlu0 %v1129_v50  ;;  %v1076_v1 = vadd.f32 %v1073_v12, %v1066_v59 }
 0x131   : > { %v1096_v60 = vadd.f32 %v1093_v53, %v1085_v51 }
 0x132   : > { %v1086_v8 = vadd.f32 %v1083_v19, %v1076_v1 }
 0x133   : > { %v1106_v4 = vadd.f32 %v1103_v41, %v1096_v60 }
 0x134   : > { %v1097_v11 = vadd.f32 %v1094_v2, %v1086_v8 }
 0x135   : > { %v1116_v9 = vadd.f32 %v1113_v5, %v1106_v4 }
 0x136   : > { %v1107_v16 = vadd.f32 %v1104_v45, %v1097_v11 }
 0x137   : > { %v1126_v15 = vadd.f32 %v1123_v20, %v1116_v9 }
 0x138   : > { %v1117_v55 = vadd.f32 %v1114_v14, %v1107_v16 }
 0x139   : > { %v1132_v43 = vsel %vm1128_vm4, %v1126_v15, 0.0 }
 0x13a   : > { %1133 = vadd.xlane.f32.xlu0 %v1132_v43  ;;  %v1127_v17 = vadd.f32 %v1124_v42, %v1117_v55 }
 0x13c   : > { %v1135_v18 = vsel %vm1128_vm4, %v1127_v17, 0.0 }
 0x13d   : > { %1136 = vadd.xlane.f32.xlu1 %v1135_v18 }
 0x156   : > { %1142 = vperm.xlu1 %1598, %v1601_v52  }
 0x1a3   : > { %v1131_v21 = vpop.xlane.xlu0 %1130 }
 0x1ad   : > { %v1134_v7 = vpop.xlane.xlu0 %1133 }
 0x1b0   : > { %v1137_v22 = vpop.xlane.xlu1 %1136 }
 0x1c8   : > { %v1143_v25 = vpop.permute.xlu1 %1142 }
 0x1c9   : > { %v1145_v26 = vadd.f32 %v1143_v25, %v1131_v21  ;;  %v1146_v27 = vadd.f32 %v1143_v25, %v1134_v7  ;;  %v1147_v13 = vadd.f32 %v1143_v25, %v1137_v22 }
 0x1cb   : > { %v1153_v63 = vperm.slane %v1145_v26, %v1152_v24  ;;  %v1154_v28 = vperm.slane %v1146_v27, %v1152_v24  ;;  %v1155_v30 = vperm.slane %v1147_v13, %v1152_v24 }
 0x1cd   : > { %v1157_v32 = vsel %vm1156_vm5, %v1154_v28, %v1153_v63 }
 0x1ce   : > { %v1159_v57 = vsel %vm1158_vm6, %v1155_v30, %v1157_v32 }
 0x1cf   : > { %1162 = vst.msk [vmem:[%s224_s19] sm:$0x7] %vm1161_vm7, %v1159_v57 }
 0x1d0 PF: > { %s17_s20 = sadd.s32 1, %s1612_s20  }
 0x1d1   : > { %p14_p4 = scmp.ge.s32.totalorder %s17_s20, 4  }
 0x1d3   :  { %16 = sbr.rel (!%p14_p4) target bundleno = 3 (0x3), region = 73 }

</bundles_post_ra>
